<compile_context>
chip_gen: v5e
topology: v5e:2x2
jax: 0.10.0
libtpu: 0.0.40
codegen_flags: <defaults>
</compile_context>

<pallas_src>
import functools
import math

import numpy as np
import jax
import jax.numpy as jnp
from jax.experimental import pallas as pl


# ----------------------------------------------------------------------------
# Constant (scaled 0/1) matrices: mean-reductions, broadcasts, attention
# expand/reduce maps.  Built once per shape (lru_cache) with numpy so they
# fold as literals under jit.  Lane index conventions:
#   L = M*K*NR*NT   flattened (m, k, r, t)
#   E = M*K*K*NT    flattened (m, k1, k2, t)
#   P = M*K*K       flattened (m, k1, k2)
# ----------------------------------------------------------------------------
@functools.lru_cache(maxsize=None)
def _build_constants_np(M, K, NR, NT):
    Sp = K * NR * NT
    L = M * Sp
    E = M * K * K * NT
    P = M * K * K

    lane = np.arange(L)
    m_i = lane // Sp
    s_i = lane % Sp
    k_i = s_i // (NR * NT)
    r_i = (s_i // NT) % NR
    t_i = s_i % NT

    e_lane = np.arange(E)
    em = e_lane // (K * K * NT)
    ek1 = (e_lane // (K * NT)) % K
    ek2 = (e_lane // NT) % K
    et = e_lane % NT

    p_lane = np.arange(P)
    pm = p_lane // (K * K)
    pk1 = (p_lane // K) % K
    pk2 = p_lane % K

    f32 = np.float32
    # 0.1 * (mean over M, broadcast back over M)            : (L, L)
    C2 = (0.1 / M) * (s_i[:, None] == s_i[None, :]).astype(f32)
    # 0.1 * (mean over NT, broadcast back over NT)          : (L, L)
    C3 = (0.1 / NT) * ((m_i[:, None] == m_i[None, :]) &
                       (k_i[:, None] == k_i[None, :]) &
                       (r_i[:, None] == r_i[None, :])).astype(f32)
    # 0.5 * (mean over NR, broadcast back over NR)          : (L, L)
    C4 = (0.5 / NR) * ((m_i[:, None] == m_i[None, :]) &
                       (k_i[:, None] == k_i[None, :]) &
                       (t_i[:, None] == t_i[None, :])).astype(f32)
    # mean over NR, expand k -> (k1, k2): q uses k1          : (L, E)
    Cq = (1.0 / NR) * ((m_i[:, None] == em[None, :]) &
                       (k_i[:, None] == ek1[None, :]) &
                       (t_i[:, None] == et[None, :])).astype(f32)
    # mean over NR, expand k -> (k1, k2): k / v use k2       : (L, E)
    Ckv = (1.0 / NR) * ((m_i[:, None] == em[None, :]) &
                        (k_i[:, None] == ek2[None, :]) &
                        (t_i[:, None] == et[None, :])).astype(f32)
    # (1/NT) * sum over t                                    : (E, P)
    Rt = (1.0 / NT) * ((em[:, None] == pm[None, :]) &
                       (ek1[:, None] == pk1[None, :]) &
                       (ek2[:, None] == pk2[None, :])).astype(f32)
    # broadcast over t                                       : (P, E)
    Ea = np.ascontiguousarray((NT * Rt).T)
    # (2/K) * (sum over k2, broadcast over NR)               : (E, L)
    E5 = (2.0 / K) * ((em[:, None] == m_i[None, :]) &
                      (ek1[:, None] == k_i[None, :]) &
                      (et[:, None] == t_i[None, :])).astype(f32)

    return C2, C3, C4, Cq, Ckv, Rt, Ea, E5


# ----------------------------------------------------------------------------
# Fused kernel: stacked matmul (both batches) + attention + weighted combine
#               + ReLU + fused BatchNorm (stats + apply).  Gridless, one call.
# ----------------------------------------------------------------------------
def _fused_layer_bn_kernel(w_ref, c2_ref, c3_ref, c4_ref, cq_ref, ckv_ref,
                           rt_ref, ea_ref, e5_ref, x_ref, gamma_ref, beta_ref,
                           out_ref, *, B, O, n, eps):
    f32 = jnp.float32
    BO = B * O

    def dot(a, b):
        return jnp.dot(a, b, preferred_element_type=f32)

    # One MXU push produces all 7 streams for both batches.  Row layout of Y:
    # [stream][batch][out_channel]; every slice below is 16-row sublane-aligned.
    # Stream order: P1, P2, P3, P4, Q, K, P5  (K and P5 adjacent -> merged push).
    Y = dot(w_ref[...], x_ref[...])                     # (7*BO, L)
    y1 = Y[0 * BO:1 * BO]
    y2 = Y[1 * BO:2 * BO]
    y3 = Y[2 * BO:3 * BO]
    y4 = Y[3 * BO:4 * BO]
    yq = Y[4 * BO:5 * BO]
    ykv = Y[5 * BO:7 * BO]                              # [K-stream ; P5-stream]

    # Attention on the MXU via constant expand/reduce matrices.
    q_exp = dot(yq, cq_ref[...])                        # (BO, E): q[m,k1,t] bcast over k2
    kv_exp = dot(ykv, ckv_ref[...])                     # (2BO, E): k/v[m,k2,t] bcast over k1
    k_exp = kv_exp[0:BO]
    v_exp = kv_exp[BO:2 * BO]
    alpha = jnp.tanh(dot(q_exp * k_exp, rt_ref[...]))   # (BO, P) = tanh(q.k / NT)
    a5 = dot(dot(alpha, ea_ref[...]) * v_exp, e5_ref[...])   # (BO, L): 2/K * alpha@v, NR-bcast

    res = (y1 + dot(y2, c2_ref[...]) + dot(y3, c3_ref[...])
           + dot(y4, c4_ref[...]) + a5)
    res = jnp.maximum(res, 0.0)                         # ReLU

    # Fused BatchNorm1d (training-mode batch statistics, biased variance).
    # TODO(synk): running_mean / running_var buffer updates are not modeled.
    ssum = jnp.sum(res, axis=1, keepdims=True)          # (BO, 1)
    ssq = jnp.sum(res * res, axis=1, keepdims=True)     # (BO, 1)
    tot = ssum[0:O]
    tot2 = ssq[0:O]
    for b in range(1, B):                               # static unroll over B
        tot = tot + ssum[b * O:(b + 1) * O]
        tot2 = tot2 + ssq[b * O:(b + 1) * O]
    mean = tot * (1.0 / n)
    var = tot2 * (1.0 / n) - mean * mean
    scale = gamma_ref[...] * jax.lax.rsqrt(var + eps)   # (O, 1)
    shift = beta_ref[...] - mean * scale                # (O, 1)

    for b in range(B):                                  # lane-dense (O, 256) stores
        lo, hi = b * O, (b + 1) * O
        out_ref[lo:hi, :] = res[lo:hi] * scale + shift


# ----------------------------------------------------------------------------
# Wrapper
# ----------------------------------------------------------------------------
def layer_3d_dep_forward(A, params, eps=1e-5):
    P1, P2, P3, P4, P5, Qw, Kw = (params[n] for n in
                                  ("P1", "P2", "P3", "P4", "P5", "Q", "K"))
    gamma, beta = params["gamma"], params["beta"]

    B, Cin, M, K, NR, NT = A.shape
    O = P1.shape[0]
    L = M * K * NR * NT
    E = M * K * K * NT
    P_ = M * K * K
    BO = B * O

    # Metadata-only reshape: rows = [batch][channel], lanes = (m, k, r, t).
    X = A.reshape(B * Cin, L)

    # Stacked weights, block-diagonal over batch so batch rides the MXU
    # sublanes of every matmul.  Tiny (112, 8) prep op.
    W7 = jnp.stack([P1, P2, P3, P4, Qw, Kw, P5], axis=0)       # (7, O, Cin)
    eyeB = jnp.eye(B, dtype=W7.dtype)
    Wbig = (W7[:, None, :, None, :] * eyeB[None, :, None, :, None]
            ).reshape(7 * BO, B * Cin)                         # (7*B*O, B*Cin)

    consts = tuple(jnp.asarray(c) for c in _build_constants_np(M, K, NR, NT))

    const_elems = 3 * L * L + 2 * L * E + E * P_ + P_ * E + E * L
    flops = (2 * (7 * BO) * (B * Cin) * L        # stacked weight matmul
             + 2 * BO * L * E                    # q expand
             + 2 * (2 * BO) * L * E              # merged k/v expand
             + 2 * BO * E * P_                   # q.k reduce over t
             + 2 * BO * P_ * E                   # alpha broadcast over t
             + 2 * BO * E * L                    # alpha@v reduce over k2
             + 3 * 2 * BO * L * L)               # C2/C3/C4 mean-broadcasts
    bytes_accessed = 4 * (const_elems + (7 * BO) * (B * Cin)
                          + B * Cin * L + 2 * O + BO * L)
    cost = pl.CostEstimate(flops=flops,
                           transcendentals=BO * P_ + O,
                           bytes_accessed=bytes_accessed)

    out = pl.pallas_call(
        functools.partial(_fused_layer_bn_kernel, B=B, O=O, n=B * L, eps=eps),
        out_shape=jax.ShapeDtypeStruct((BO, L), jnp.float32),
        cost_estimate=cost,
    )(Wbig, *consts, X, gamma.reshape(O, 1), beta.reshape(O, 1))

    # Rows are [batch][channel], lanes (m,k,r,t): metadata-only reshape back.
    return out.reshape(B, O, M, K, NR, NT)


# ----------------------------------------------------------------------------
# Pure-JAX reference (mirrors the PyTorch forward) for correctness checking
# ----------------------------------------------------------------------------
def reference_forward(A, params):
    P1, P2, P3, P4, P5, Qw, Kw = (params[n] for n in
                                  ("P1", "P2", "P3", "P4", "P5", "Q", "K"))
    gamma, beta = params["gamma"], params["beta"]
    B, Cin, M, K, NR, NT = A.shape
    O = P1.shape[0]

    def mm(P, X):
        return jnp.einsum('oi,bin->bon', P, X, precision='highest')

    A1 = mm(P1, A.reshape(B, Cin, -1)).reshape(B, O, M, K, NR, NT)
    A2 = mm(P2, jnp.mean(A, axis=2).reshape(B, Cin, -1)).reshape(B, O, 1, K, NR, NT)
    A3 = mm(P3, jnp.mean(A, axis=5).reshape(B, Cin, -1)).reshape(B, O, M, K, NR, 1)
    A4 = mm(P4, jnp.mean(A, axis=4).reshape(B, Cin, -1)).reshape(B, O, M, K, 1, NT)
    temp = jnp.mean(A, axis=4).reshape(B, Cin, -1)
    q = mm(Qw, temp).reshape(B, O, M, K, NT)
    k = mm(Kw, temp).reshape(B, O, M, K, NT)
    alpha = jnp.tanh(jnp.einsum('bomkt,bomct->bomkc', q, k,
                                precision='highest') / NT)
    v = mm(P5, temp).reshape(B, O, M, K, NT)
    A5 = (jnp.einsum('bomkc,bomct->bomkt', alpha, v,
                     precision='highest') / K).reshape(B, O, M, K, 1, NT)
    out = A1 + 0.1 * A2 + 0.1 * A3 + 0.5 * A4 + 2.0 * A5
    out = jnp.maximum(out, 0.0)
    flat = out.reshape(B, O, -1)
    mean = jnp.mean(flat, axis=(0, 2), keepdims=True)
    var = jnp.mean(jnp.square(flat - mean), axis=(0, 2), keepdims=True)
    flat = ((flat - mean) * jax.lax.rsqrt(var + 1e-5)
            * gamma.reshape(1, O, 1) + beta.reshape(1, O, 1))
    return flat.reshape(B, O, M, K, NR, NT)


if __name__ == "__main__":
    # Small shapes consistent with the module's forward.
    B, input_dim, output_dim = 2, 4, 8
    M, K, NR, NT = 4, 4, 4, 4

    key = jax.random.PRNGKey(0)
    k_a, k1, k2, k3, k4, k5, kq, kk = jax.random.split(key, 8)

    ini = math.sqrt(3.0 / output_dim / input_dim)

    def init_w(k):
        return jax.random.uniform(k, (output_dim, input_dim), jnp.float32,
                                  minval=-ini, maxval=ini)

    params = dict(
        P1=init_w(k1), P2=init_w(k2), P3=init_w(k3), P4=init_w(k4),
        P5=init_w(k5), Q=init_w(kq), K=init_w(kk),
        gamma=jnp.ones((output_dim,), jnp.float32),   # BatchNorm1d weight init
        beta=jnp.zeros((output_dim,), jnp.float32),   # BatchNorm1d bias init
    )

    A = jax.random.normal(k_a, (B, input_dim, M, K, NR, NT), jnp.float32)

    out = jax.jit(layer_3d_dep_forward)(A, params)
    out = jax.block_until_ready(out)

    ref = reference_forward(A, params)
    assert out.shape == (B, output_dim, M, K, NR, NT)
    max_err = jnp.max(jnp.abs(out - ref))
    assert jnp.allclose(out, ref, atol=1e-3, rtol=1e-3), \
        f"max abs err {max_err}"

    print("KERNEL_OK")
</pallas_src>

<mosaic_0001>
module attributes {stable_mosaic.version = 11 : i64} {
  func.func @_fused_layer_bn_kernel(%arg0: memref<112x8xf32, #tpu.memory_space<vmem>>, %arg1: memref<256x256xf32, #tpu.memory_space<vmem>>, %arg2: memref<256x256xf32, #tpu.memory_space<vmem>>, %arg3: memref<256x256xf32, #tpu.memory_space<vmem>>, %arg4: memref<256x256xf32, #tpu.memory_space<vmem>>, %arg5: memref<256x256xf32, #tpu.memory_space<vmem>>, %arg6: memref<256x64xf32, #tpu.memory_space<vmem>>, %arg7: memref<64x256xf32, #tpu.memory_space<vmem>>, %arg8: memref<256x256xf32, #tpu.memory_space<vmem>>, %arg9: memref<8x256xf32, #tpu.memory_space<vmem>>, %arg10: memref<8x1xf32, #tpu.memory_space<vmem>>, %arg11: memref<8x1xf32, #tpu.memory_space<vmem>>, %arg12: memref<16x256xf32, #tpu.memory_space<vmem>>) attributes {dimension_semantics = [], scalar_prefetch = 0 : i64, scratch_operands = 0 : i64, tpu.core_type = #tpu.core_type<tc>} {
    %c0 = arith.constant 0 : index
    %c0_0 = arith.constant 0 : index
    %0 = vector.load %arg0[%c0, %c0_0] : memref<112x8xf32, #tpu.memory_space<vmem>>, vector<112x8xf32>
    %c0_1 = arith.constant 0 : index
    %c0_2 = arith.constant 0 : index
    %1 = vector.load %arg9[%c0_1, %c0_2] : memref<8x256xf32, #tpu.memory_space<vmem>>, vector<8x256xf32>
    %cst = arith.constant dense<0.000000e+00> : vector<112x256xf32>
    %2 = tpu.matmul %0, %1, %cst {dimension_numbers = #tpu.dot_dimension_numbers<[1], [0], [0], [1], [0, 0, 1, 1], [], []>} : vector<112x8xf32>, vector<8x256xf32>, vector<112x256xf32> -> vector<112x256xf32>
    %3 = vector.extract_strided_slice %2 {offsets = [0, 0], sizes = [16, 256], strides = [1, 1]} : vector<112x256xf32> to vector<16x256xf32>
    %4 = vector.extract_strided_slice %2 {offsets = [16, 0], sizes = [16, 256], strides = [1, 1]} : vector<112x256xf32> to vector<16x256xf32>
    %5 = vector.extract_strided_slice %2 {offsets = [32, 0], sizes = [16, 256], strides = [1, 1]} : vector<112x256xf32> to vector<16x256xf32>
    %6 = vector.extract_strided_slice %2 {offsets = [48, 0], sizes = [16, 256], strides = [1, 1]} : vector<112x256xf32> to vector<16x256xf32>
    %7 = vector.extract_strided_slice %2 {offsets = [64, 0], sizes = [16, 256], strides = [1, 1]} : vector<112x256xf32> to vector<16x256xf32>
    %8 = vector.extract_strided_slice %2 {offsets = [80, 0], sizes = [32, 256], strides = [1, 1]} : vector<112x256xf32> to vector<32x256xf32>
    %c0_3 = arith.constant 0 : index
    %c0_4 = arith.constant 0 : index
    %9 = vector.load %arg4[%c0_3, %c0_4] : memref<256x256xf32, #tpu.memory_space<vmem>>, vector<256x256xf32>
    %cst_5 = arith.constant dense<0.000000e+00> : vector<16x256xf32>
    %10 = tpu.matmul %7, %9, %cst_5 {dimension_numbers = #tpu.dot_dimension_numbers<[1], [0], [0], [1], [0, 0, 1, 1], [], []>} : vector<16x256xf32>, vector<256x256xf32>, vector<16x256xf32> -> vector<16x256xf32>
    %c0_6 = arith.constant 0 : index
    %c0_7 = arith.constant 0 : index
    %11 = vector.load %arg5[%c0_6, %c0_7] : memref<256x256xf32, #tpu.memory_space<vmem>>, vector<256x256xf32>
    %cst_8 = arith.constant dense<0.000000e+00> : vector<32x256xf32>
    %12 = tpu.matmul %8, %11, %cst_8 {dimension_numbers = #tpu.dot_dimension_numbers<[1], [0], [0], [1], [0, 0, 1, 1], [], []>} : vector<32x256xf32>, vector<256x256xf32>, vector<32x256xf32> -> vector<32x256xf32>
    %13 = vector.extract_strided_slice %12 {offsets = [0, 0], sizes = [16, 256], strides = [1, 1]} : vector<32x256xf32> to vector<16x256xf32>
    %14 = vector.extract_strided_slice %12 {offsets = [16, 0], sizes = [16, 256], strides = [1, 1]} : vector<32x256xf32> to vector<16x256xf32>
    %15 = arith.mulf %10, %13 : vector<16x256xf32>
    %c0_9 = arith.constant 0 : index
    %c0_10 = arith.constant 0 : index
    %16 = vector.load %arg6[%c0_9, %c0_10] : memref<256x64xf32, #tpu.memory_space<vmem>>, vector<256x64xf32>
    %cst_11 = arith.constant dense<0.000000e+00> : vector<16x64xf32>
    %17 = tpu.matmul %15, %16, %cst_11 {dimension_numbers = #tpu.dot_dimension_numbers<[1], [0], [0], [1], [0, 0, 1, 1], [], []>} : vector<16x256xf32>, vector<256x64xf32>, vector<16x64xf32> -> vector<16x64xf32>
    %18 = math.tanh %17 : vector<16x64xf32>
    %c0_12 = arith.constant 0 : index
    %c0_13 = arith.constant 0 : index
    %19 = vector.load %arg7[%c0_12, %c0_13] : memref<64x256xf32, #tpu.memory_space<vmem>>, vector<64x256xf32>
    %cst_14 = arith.constant dense<0.000000e+00> : vector<16x256xf32>
    %20 = tpu.matmul %18, %19, %cst_14 {dimension_numbers = #tpu.dot_dimension_numbers<[1], [0], [0], [1], [0, 0, 1, 1], [], []>} : vector<16x64xf32>, vector<64x256xf32>, vector<16x256xf32> -> vector<16x256xf32>
    %21 = arith.mulf %20, %14 : vector<16x256xf32>
    %c0_15 = arith.constant 0 : index
    %c0_16 = arith.constant 0 : index
    %22 = vector.load %arg8[%c0_15, %c0_16] : memref<256x256xf32, #tpu.memory_space<vmem>>, vector<256x256xf32>
    %cst_17 = arith.constant dense<0.000000e+00> : vector<16x256xf32>
    %23 = tpu.matmul %21, %22, %cst_17 {dimension_numbers = #tpu.dot_dimension_numbers<[1], [0], [0], [1], [0, 0, 1, 1], [], []>} : vector<16x256xf32>, vector<256x256xf32>, vector<16x256xf32> -> vector<16x256xf32>
    %c0_18 = arith.constant 0 : index
    %c0_19 = arith.constant 0 : index
    %24 = vector.load %arg1[%c0_18, %c0_19] : memref<256x256xf32, #tpu.memory_space<vmem>>, vector<256x256xf32>
    %cst_20 = arith.constant dense<0.000000e+00> : vector<16x256xf32>
    %25 = tpu.matmul %4, %24, %cst_20 {dimension_numbers = #tpu.dot_dimension_numbers<[1], [0], [0], [1], [0, 0, 1, 1], [], []>} : vector<16x256xf32>, vector<256x256xf32>, vector<16x256xf32> -> vector<16x256xf32>
    %26 = arith.addf %3, %25 : vector<16x256xf32>
    %c0_21 = arith.constant 0 : index
    %c0_22 = arith.constant 0 : index
    %27 = vector.load %arg2[%c0_21, %c0_22] : memref<256x256xf32, #tpu.memory_space<vmem>>, vector<256x256xf32>
    %cst_23 = arith.constant dense<0.000000e+00> : vector<16x256xf32>
    %28 = tpu.matmul %5, %27, %cst_23 {dimension_numbers = #tpu.dot_dimension_numbers<[1], [0], [0], [1], [0, 0, 1, 1], [], []>} : vector<16x256xf32>, vector<256x256xf32>, vector<16x256xf32> -> vector<16x256xf32>
    %29 = arith.addf %26, %28 : vector<16x256xf32>
    %c0_24 = arith.constant 0 : index
    %c0_25 = arith.constant 0 : index
    %30 = vector.load %arg3[%c0_24, %c0_25] : memref<256x256xf32, #tpu.memory_space<vmem>>, vector<256x256xf32>
    %cst_26 = arith.constant dense<0.000000e+00> : vector<16x256xf32>
    %31 = tpu.matmul %6, %30, %cst_26 {dimension_numbers = #tpu.dot_dimension_numbers<[1], [0], [0], [1], [0, 0, 1, 1], [], []>} : vector<16x256xf32>, vector<256x256xf32>, vector<16x256xf32> -> vector<16x256xf32>
    %32 = arith.addf %29, %31 : vector<16x256xf32>
    %33 = arith.addf %32, %23 : vector<16x256xf32>
    %cst_27 = arith.constant 0.000000e+00 : f32
    %34 = vector.broadcast %cst_27 : f32 to vector<16x256xf32>
    %35 = arith.maximumf %33, %34 : vector<16x256xf32>
    %cst_28 = arith.constant dense<0.000000e+00> : vector<16xf32>
    %36 = vector.multi_reduction <add>, %35, %cst_28 [1] : vector<16x256xf32> to vector<16xf32>
    %37 = vector.shape_cast %36 : vector<16xf32> to vector<16x1xf32>
    %38 = arith.mulf %35, %35 : vector<16x256xf32>
    %cst_29 = arith.constant dense<0.000000e+00> : vector<16xf32>
    %39 = vector.multi_reduction <add>, %38, %cst_29 [1] : vector<16x256xf32> to vector<16xf32>
    %40 = vector.shape_cast %39 : vector<16xf32> to vector<16x1xf32>
    %41 = vector.extract_strided_slice %37 {offsets = [0, 0], sizes = [8, 1], strides = [1, 1]} : vector<16x1xf32> to vector<8x1xf32>
    %42 = vector.extract_strided_slice %40 {offsets = [0, 0], sizes = [8, 1], strides = [1, 1]} : vector<16x1xf32> to vector<8x1xf32>
    %43 = vector.extract_strided_slice %37 {offsets = [8, 0], sizes = [8, 1], strides = [1, 1]} : vector<16x1xf32> to vector<8x1xf32>
    %44 = arith.addf %41, %43 : vector<8x1xf32>
    %45 = vector.extract_strided_slice %40 {offsets = [8, 0], sizes = [8, 1], strides = [1, 1]} : vector<16x1xf32> to vector<8x1xf32>
    %46 = arith.addf %42, %45 : vector<8x1xf32>
    %cst_30 = arith.constant 0.001953125 : f32
    %47 = vector.broadcast %cst_30 : f32 to vector<8x1xf32>
    %48 = arith.mulf %44, %47 : vector<8x1xf32>
    %cst_31 = arith.constant 0.001953125 : f32
    %49 = vector.broadcast %cst_31 : f32 to vector<8x1xf32>
    %50 = arith.mulf %46, %49 : vector<8x1xf32>
    %51 = arith.mulf %48, %48 : vector<8x1xf32>
    %52 = arith.subf %50, %51 : vector<8x1xf32>
    %c0_32 = arith.constant 0 : index
    %c0_33 = arith.constant 0 : index
    %53 = vector.load %arg10[%c0_32, %c0_33] : memref<8x1xf32, #tpu.memory_space<vmem>>, vector<8x1xf32>
    %cst_34 = arith.constant 9.99999974E-6 : f32
    %54 = vector.broadcast %cst_34 : f32 to vector<8x1xf32>
    %55 = arith.addf %52, %54 : vector<8x1xf32>
    %56 = math.rsqrt %55 : vector<8x1xf32>
    %57 = arith.mulf %53, %56 : vector<8x1xf32>
    %c0_35 = arith.constant 0 : index
    %c0_36 = arith.constant 0 : index
    %58 = vector.load %arg11[%c0_35, %c0_36] : memref<8x1xf32, #tpu.memory_space<vmem>>, vector<8x1xf32>
    %59 = arith.mulf %48, %57 : vector<8x1xf32>
    %60 = arith.subf %58, %59 : vector<8x1xf32>
    %61 = vector.extract_strided_slice %35 {offsets = [0, 0], sizes = [8, 256], strides = [1, 1]} : vector<16x256xf32> to vector<8x256xf32>
    %62 = vector.broadcast %57 : vector<8x1xf32> to vector<8x256xf32>
    %63 = arith.mulf %61, %62 : vector<8x256xf32>
    %64 = vector.broadcast %60 : vector<8x1xf32> to vector<8x256xf32>
    %65 = arith.addf %63, %64 : vector<8x256xf32>
    %c0_37 = arith.constant 0 : index
    %c0_38 = arith.constant 0 : index
    %66 = vector.load %arg12[%c0_37, %c0_38] : memref<16x256xf32, #tpu.memory_space<vmem>>, vector<8x256xf32>
    tpu.vector_store %arg12[%c0_37, %c0_38], %65 {strides = array<i32>} : memref<16x256xf32, #tpu.memory_space<vmem>>, vector<8x256xf32>,
    %67 = vector.extract_strided_slice %35 {offsets = [8, 0], sizes = [8, 256], strides = [1, 1]} : vector<16x256xf32> to vector<8x256xf32>
    %68 = vector.broadcast %57 : vector<8x1xf32> to vector<8x256xf32>
    %69 = arith.mulf %67, %68 : vector<8x256xf32>
    %70 = vector.broadcast %60 : vector<8x1xf32> to vector<8x256xf32>
    %71 = arith.addf %69, %70 : vector<8x256xf32>
    %c8 = arith.constant 8 : index
    %c0_39 = arith.constant 0 : index
    %72 = vector.load %arg12[%c8, %c0_39] : memref<16x256xf32, #tpu.memory_space<vmem>>, vector<8x256xf32>
    tpu.vector_store %arg12[%c8, %c0_39], %71 {strides = array<i32>} : memref<16x256xf32, #tpu.memory_space<vmem>>, vector<8x256xf32>,
    return
  }
}

</mosaic_0001>

<bundles_post_ra>
// kernel: layer_3d_dep_forward.1
= control target key start
LH: loop header
LB: loop body
LE: loop exit
PB: predicated region body
PF: predicated region fallthrough
CT: control target
= control target key end

     0   :  { %17 = vsyncpa [#allocation3], 0  ;;  %s2505_s0 = inlined_call_operand.vmem [shape: f32[112,8], index: 0, kind: input, shape index: {}]   ;;  %s2506_s1 = inlined_call_operand.hbm [shape: f32[256,256], index: 1, kind: input, shape index: {}]   ;;  %s2507_s2 = inlined_call_operand.hbm [shape: f32[256,256], index: 2, kind: input, shape index: {}]   ;;  %s2508_s3 = inlined_call_operand.hbm [shape: f32[256,256], index: 3, kind: input, shape index: {}]   ;;  %s2509_s4 = inlined_call_operand.hbm [shape: f32[256,256], index: 4, kind: input, shape index: {}]   ;;  %s2510_s5 = inlined_call_operand.vmem [shape: f32[256,256], index: 5, kind: input, shape index: {}]   ;;  %s2511_s6 = inlined_call_operand.hbm [shape: f32[256,64], index: 6, kind: input, shape index: {}]   ;;  %s2512_s7 = inlined_call_operand.hbm [shape: f32[64,256], index: 7, kind: input, shape index: {}]   ;;  %s2513_s8 = inlined_call_operand.vmem [shape: f32[256,256], index: 8, kind: input, shape index: {}]   ;;  %s2514_s9 = inlined_call_operand.vmem [shape: f32[8,256], index: 9, kind: input, shape index: {}]   ;;  %s2515_s10 = inlined_call_operand.vmem [shape: f32[8,1], index: 10, kind: input, shape index: {}]   ;;  %s2516_s11 = inlined_call_operand.vmem [shape: f32[8,1], index: 11, kind: input, shape index: {}]   ;;  %s2517_s12 = inlined_call_operand.vmem [shape: f32[16,256], index: 12, kind: output, shape index: {}]  }
   0x1   :  { %18 = vsyncpa [#allocation5], 0 }
   0x2   :  { %19 = vsyncpa [#allocation8], 0 }
   0x3   :  { %20 = vsyncpa [#allocation11], 0  ;;  %s40_s23 = sshll.u32 %s2507_s2, 4  ;;  %s1752_s24 = smov [#allocation4]   ;;  %s41_s23 = int_to_ptr.hbm [resolvable:$true] %s40_s23 }
   0x4   :  { %s42_s25 = sshll.u32 %s1752_s24, 4  ;;  %s66_s28 = sshll.u32 %s2509_s4, 4  ;;  %s43_s25 = int_to_ptr.vmem [resolvable:$true] %s42_s25  ;;  %s67_s28 = int_to_ptr.hbm [resolvable:$true] %s66_s28 }
   0x5   :  { %s1753_s29 = smov 256   ;;  %s1754_s30 = smov 16  }
   0x6   :  { %48 = dma.hbm_to_vmem [thread:$0]  %s41_s23, 8192, %s43_s25, [#allocation5], %s1753_s29, %s1753_s29, %s1754_s30  }
   0x7   :  { %s1755_s13 = smov [#allocation7]   ;;  %s27_s2 = sshll.u32 %s2506_s1, 4  ;;  %s28_s2 = int_to_ptr.hbm [resolvable:$true] %s27_s2 }
   0x8   :  { %s68_s14 = sshll.u32 %s1755_s13, 4  ;;  %s53_s18 = sshll.u32 %s2508_s3, 4  ;;  %s69_s14 = int_to_ptr.vmem [resolvable:$true] %s68_s14  ;;  %s54_s18 = int_to_ptr.hbm [resolvable:$true] %s53_s18 }
   0x9   :  { %74 = dma.hbm_to_vmem [thread:$0]  %s67_s28, 8192, %s69_s14, [#allocation8], %s1753_s29, %s1753_s29, %s1754_s30  }
   0xa   :  { %s1756_s19 = smov [#allocation2]   ;;  %s1757_s21 = smov [#allocation6]  }
   0xb   :  { %s29_s20 = sshll.u32 %s1756_s19, 4  ;;  %s55_s1 = sshll.u32 %s1757_s21, 4  ;;  %s30_s20 = int_to_ptr.vmem [resolvable:$true] %s29_s20  ;;  %s56_s1 = int_to_ptr.vmem [resolvable:$true] %s55_s1 }
   0xc   :  { %35 = dma.hbm_to_vmem [thread:$0]  %s28_s2, 8192, %s30_s20, [#allocation3], %s1753_s29, %s1753_s29, %s1754_s30  }
   0xd   :  { %s81_s24 = sshll.u32 %s2511_s6, 4  ;;  %s1758_s3 = smov [#allocation9]   ;;  %s82_s24 = int_to_ptr.hbm [resolvable:$true] %s81_s24 }
   0xe   :  { %61 = dma.hbm_to_vmem [thread:$0]  %s54_s18, 8192, %s56_s1, [#allocation5], %s1753_s29, %s1753_s29, %s1754_s30  }
   0xf   :  { %s83_s25 = sshll.u32 %s1758_s3, 4  ;;  %s94_s28 = sshll.u32 %s2512_s7, 4  ;;  %s84_s25 = int_to_ptr.vmem [resolvable:$true] %s83_s25  ;;  %s95_s28 = int_to_ptr.hbm [resolvable:$true] %s94_s28 }
  0x10   :  { %s1759_s13 = smov 128   ;;  %s1760_s14 = smov 8  }
  0x11   :  { %89 = dma.hbm_to_vmem [thread:$0]  %s82_s24, 4096, %s84_s25, [#allocation8], %s1759_s13, %s1759_s13, %s1760_s14  }
  0x12   :  { %s1761_s15 = smov [#allocation10]  }
  0x13   :  { %s96_s16 = sshll.u32 %s1761_s15, 4  ;;  %s97_s16 = int_to_ptr.vmem [resolvable:$true] %s96_s16 }
  0x14   :  { %102 = dma.hbm_to_vmem [thread:$0]  %s95_s28, 2048, %s97_s16, [#allocation11], %s1753_s29, %s1753_s29, %s1754_s30  }
  0x15   :  { %1744 = dma.done.wait [#allocation3], 8192  }
  0x16   :  { %1745 = vsyncadd [#allocation3], 4294959104 }
  0x17   :  { %1746 = dma.done.wait [#allocation5], 16384  }
  0x18   :  { %1747 = vsyncadd [#allocation5], 4294950912 }
  0x19   :  { %1748 = dma.done.wait [#allocation8], 12288  }
  0x1a   :  { %1749 = vsyncadd [#allocation8], 4294955008 }
  0x1b   :  { %1750 = dma.done.wait [#allocation11], 2048  }
  0x1c   :  { %1751 = vsyncadd [#allocation11], 4294965248  ;;  %vm151_vm0 = vcmask 64512   ;;  %v149_v0 = vld [vmem:[%s2514_s9] sm:$0xff]  ;;  %v150_v1 = vld [vmem:[%s2514_s9 + $0x8] sm:$0xff]  ;;  %vm748_vm1 = vcmask 523264  }
  0x1d   :  { %v135_v2 = vld [vmem:[%s2505_s0] sm:$0xff]  ;;  %209 = vmatpush.msra.mxu0 %v149_v0  ;;  %268 = vmatpush.msra.mxu1 %v150_v1  ;;  %v136_v3 = vld [vmem:[%s2505_s0 + $0x8] sm:$0xff]  ;;  %v137_v4 = vld [vmem:[%s2505_s0 + $0x10] sm:$0xff] }
  0x1e   :  { %1517 = vmatmul.msk.f32.vlgmr.msra.gmra.mxu0 %vm151_vm0, %v135_v2  ;;  %1531 = vmatmul.msk.f32.vlgmr.msra.gmra.mxu1 %vm151_vm0, %v135_v2  ;;  %v138_v5 = vld [vmem:[%s2505_s0 + $0x18] sm:$0xff]  ;;  %v139_v6 = vld [vmem:[%s2505_s0 + $0x20] sm:$0xff]  ;;  %v140_v7 = vld [vmem:[%s2505_s0 + $0x28] sm:$0xff] }
  0x1f   :  { %v141_v8 = vld [vmem:[%s2505_s0 + $0x30] sm:$0xff]  ;;  %v142_v9 = vld [vmem:[%s2505_s0 + $0x38] sm:$0xff]  ;;  %v143_v10 = vld [vmem:[%s2505_s0 + $0x40] sm:$0xff] }
  0x20   :  { %v144_v11 = vld [vmem:[%s2505_s0 + $0x48] sm:$0xff]  ;;  %v145_v12 = vld [vmem:[%s2505_s0 + $0x50] sm:$0xff]  ;;  %v146_v13 = vld [vmem:[%s2505_s0 + $0x58] sm:$0xff] }
  0x21   :  { %v342_v14 = vld [vmem:[#allocation7 + $0xf0] sm:$0xff]  ;;  %v340_v16 = vld [vmem:[#allocation7 + $0xe0] sm:$0xff]  ;;  %v499_v32 = vld [vmem:[%s2510_s5 + $0xf8] sm:$0xff] }
  0x22   :  { %v374_v15 = vld [vmem:[#allocation7 + $0x1f0] sm:$0xff]  ;;  %376 = vmatpush.msra.mxu2 %v342_v14  ;;  %v372_v17 = vld [vmem:[#allocation7 + $0x1e0] sm:$0xff]  ;;  %v531_v33 = vld [vmem:[%s2510_s5 + $0x1f8] sm:$0xff]  ;;  %590 = vmatpush.msrb.mxu0 %v499_v32 }
  0x23   :  { %399 = vmatpush.msra.mxu3 %v374_v15  ;;  %v338_v18 = vld [vmem:[#allocation7 + $0xd0] sm:$0xff]  ;;  %v336_v20 = vld [vmem:[#allocation7 + $0xc0] sm:$0xff]  ;;  %619 = vmatpush.msrb.mxu1 %v531_v33  ;;  %v497_v40 = vld [vmem:[%s2510_s5 + $0xe8] sm:$0xff] }
  0x24   :  { %377 = vmatpush.msra.mxu2 %v340_v16  ;;  %v370_v19 = vld [vmem:[#allocation7 + $0x1d0] sm:$0xff]  ;;  %v368_v21 = vld [vmem:[#allocation7 + $0x1c0] sm:$0xff]  ;;  %591 = vmatpush.msrb.mxu0 %v497_v40  ;;  %v529_v41 = vld [vmem:[%s2510_s5 + $0x1e8] sm:$0xff] }
  0x25   :  { %400 = vmatpush.msra.mxu3 %v372_v17  ;;  %v334_v22 = vld [vmem:[#allocation7 + $0xb0] sm:$0xff]  ;;  %v332_v24 = vld [vmem:[#allocation7 + $0xa0] sm:$0xff]  ;;  %620 = vmatpush.msrb.mxu1 %v529_v41  ;;  %v495_v52 = vld [vmem:[%s2510_s5 + $0xd8] sm:$0xff] }
  0x26   :  { %1518 = vmatmul.msk.f32.gmra.mxu0 %vm151_vm0, %v136_v3  ;;  %1532 = vmatmul.msk.f32.gmra.mxu1 %vm151_vm0, %v136_v3  ;;  %v366_v23 = vld [vmem:[#allocation7 + $0x1b0] sm:$0xff]  ;;  %v364_v25 = vld [vmem:[#allocation7 + $0x1a0] sm:$0xff]  ;;  %v527_v53 = vld [vmem:[%s2510_s5 + $0x1d8] sm:$0xff] }
  0x27   :  { %378 = vmatpush.msra.mxu2 %v338_v18  ;;  %401 = vmatpush.msra.mxu3 %v370_v19  ;;  %v330_v26 = vld [vmem:[#allocation7 + $0x90] sm:$0xff]  ;;  %v328_v28 = vld [vmem:[#allocation7 + $0x80] sm:$0xff]  ;;  %v343_v54 = vld [vmem:[#allocation7 + $0xf8] sm:$0xff] }
  0x28   :  { %v362_v27 = vld [vmem:[#allocation7 + $0x190] sm:$0xff]  ;;  %v360_v29 = vld [vmem:[#allocation7 + $0x180] sm:$0xff]  ;;  %592 = vmatpush.msrb.mxu0 %v495_v52  ;;  %v375_v55 = vld [vmem:[#allocation7 + $0x1f8] sm:$0xff]  ;;  %621 = vmatpush.msrb.mxu1 %v527_v53 }
  0x29   :  { %379 = vmatpush.msra.mxu2 %v336_v20  ;;  %402 = vmatpush.msra.mxu3 %v368_v21  ;;  %v326_v30 = vld [vmem:[#allocation7 + $0x70] sm:$0xff]  ;;  %v324_v34 = vld [vmem:[#allocation7 + $0x60] sm:$0xff]  ;;  %v341_v56 = vld [vmem:[#allocation7 + $0xe8] sm:$0xff] }
  0x2a   :  { %v358_v31 = vld [vmem:[#allocation7 + $0x170] sm:$0xff]  ;;  %v356_v35 = vld [vmem:[#allocation7 + $0x160] sm:$0xff]  ;;  %v373_v57 = vld [vmem:[#allocation7 + $0x1e8] sm:$0xff] }
  0x2b   :  { %380 = vmatpush.msra.mxu2 %v334_v22  ;;  %403 = vmatpush.msra.mxu3 %v366_v23  ;;  %v322_v36 = vld [vmem:[#allocation7 + $0x50] sm:$0xff]  ;;  %v320_v38 = vld [vmem:[#allocation7 + $0x40] sm:$0xff]  ;;  %v339_v58 = vld [vmem:[#allocation7 + $0xd8] sm:$0xff] }
  0x2c   :  { %v354_v37 = vld [vmem:[#allocation7 + $0x150] sm:$0xff]  ;;  %v352_v39 = vld [vmem:[#allocation7 + $0x140] sm:$0xff]  ;;  %v371_v59 = vld [vmem:[#allocation7 + $0x1d8] sm:$0xff] }
  0x2d   :  { %381 = vmatpush.msra.mxu2 %v332_v24  ;;  %404 = vmatpush.msra.mxu3 %v364_v25  ;;  %v318_v42 = vld [vmem:[#allocation7 + $0x30] sm:$0xff]  ;;  %v316_v44 = vld [vmem:[#allocation7 + $0x20] sm:$0xff]  ;;  %v337_v62 = vld [vmem:[#allocation7 + $0xc8] sm:$0xff] }
  0x2e   :  { %1519 = vmatmul.msk.f32.gmra.mxu0 %vm151_vm0, %v137_v4  ;;  %1533 = vmatmul.msk.f32.gmra.mxu1 %vm151_vm0, %v137_v4  ;;  %v350_v43 = vld [vmem:[#allocation7 + $0x130] sm:$0xff]  ;;  %v348_v45 = vld [vmem:[#allocation7 + $0x120] sm:$0xff]  ;;  %v369_v63 = vld [vmem:[#allocation7 + $0x1c8] sm:$0xff] }
  0x2f   :  { %382 = vmatpush.msra.mxu2 %v330_v26  ;;  %405 = vmatpush.msra.mxu3 %v362_v27  ;;  %v314_v46 = vld [vmem:[#allocation7 + $0x10] sm:$0xff]  ;;  %v312_v50 = vld [vmem:[#allocation7] sm:$0xff]  ;;  %v493_v0 = vld [vmem:[%s2510_s5 + $0xc8] sm:$0xff] }
  0x30   :  { %v346_v47 = vld [vmem:[#allocation7 + $0x110] sm:$0xff]  ;;  %v344_v51 = vld [vmem:[#allocation7 + $0x100] sm:$0xff]  ;;  %593 = vmatpush.msrb.mxu0 %v493_v0  ;;  %v525_v1 = vld [vmem:[%s2510_s5 + $0x1c8] sm:$0xff] }
  0x31   :  { %383 = vmatpush.msra.mxu2 %v328_v28  ;;  %406 = vmatpush.msra.mxu3 %v360_v29  ;;  %v335_v2 = vld [vmem:[#allocation7 + $0xb8] sm:$0xff]  ;;  %v333_v4 = vld [vmem:[#allocation7 + $0xa8] sm:$0xff]  ;;  %v147_v40 = vld [vmem:[%s2505_s0 + $0x60] sm:$0xff] }
  0x32   :  { %v367_v3 = vld [vmem:[#allocation7 + $0x1b8] sm:$0xff]  ;;  %622 = vmatpush.msrb.mxu1 %v525_v1  ;;  %v325_v16 = vld [vmem:[#allocation7 + $0x68] sm:$0xff] }
  0x33   :  { %384 = vmatpush.msra.mxu2 %v326_v30  ;;  %407 = vmatpush.msra.mxu3 %v358_v31  ;;  %v327_v14 = vld [vmem:[#allocation7 + $0x78] sm:$0xff]  ;;  %v357_v17 = vld [vmem:[#allocation7 + $0x168] sm:$0xff] }
  0x34   :  { %v359_v15 = vld [vmem:[#allocation7 + $0x178] sm:$0xff]  ;;  %v489_v18 = vld [vmem:[%s2510_s5 + $0xa8] sm:$0xff] }
  0x35   :  { %385 = vmatpush.msra.mxu2 %v324_v34  ;;  %408 = vmatpush.msra.mxu3 %v356_v35  ;;  %v521_v19 = vld [vmem:[%s2510_s5 + $0x1a8] sm:$0xff]  ;;  %v323_v20 = vld [vmem:[#allocation7 + $0x58] sm:$0xff] }
  0x36   :  { %1520 = vmatmul.msk.f32.gmra.mxu0 %vm151_vm0, %v138_v5  ;;  %1534 = vmatmul.msk.f32.gmra.mxu1 %vm151_vm0, %v138_v5  ;;  %v365_v5 = vld [vmem:[#allocation7 + $0x1a8] sm:$0xff]  ;;  %v355_v21 = vld [vmem:[#allocation7 + $0x158] sm:$0xff] }
  0x37   :  { %386 = vmatpush.msra.mxu2 %v322_v36  ;;  %409 = vmatpush.msra.mxu3 %v354_v37  ;;  %v321_v24 = vld [vmem:[#allocation7 + $0x48] sm:$0xff]  ;;  %v319_v26 = vld [vmem:[#allocation7 + $0x38] sm:$0xff] }
  0x38   :  { %v353_v25 = vld [vmem:[#allocation7 + $0x148] sm:$0xff]  ;;  %v351_v27 = vld [vmem:[#allocation7 + $0x138] sm:$0xff] }
  0x39   :  { %387 = vmatpush.msra.mxu2 %v320_v38  ;;  %410 = vmatpush.msra.mxu3 %v352_v39  ;;  %v487_v28 = vld [vmem:[%s2510_s5 + $0x98] sm:$0xff]  ;;  %v317_v30 = vld [vmem:[#allocation7 + $0x28] sm:$0xff] }
  0x3a   :  { %v519_v29 = vld [vmem:[%s2510_s5 + $0x198] sm:$0xff]  ;;  %v349_v31 = vld [vmem:[#allocation7 + $0x128] sm:$0xff] }
  0x3b   :  { %388 = vmatpush.msra.mxu2 %v318_v42  ;;  %411 = vmatpush.msra.mxu3 %v350_v43  ;;  %v315_v32 = vld [vmem:[#allocation7 + $0x18] sm:$0xff]  ;;  %v313_v36 = vld [vmem:[#allocation7 + $0x8] sm:$0xff] }
  0x3c   :  { %v347_v33 = vld [vmem:[#allocation7 + $0x118] sm:$0xff]  ;;  %v345_v37 = vld [vmem:[#allocation7 + $0x108] sm:$0xff] }
  0x3d   :  { %389 = vmatpush.msra.mxu2 %v316_v44  ;;  %412 = vmatpush.msra.mxu3 %v348_v45  ;;  %v485_v38 = vld [vmem:[%s2510_s5 + $0x88] sm:$0xff]  ;;  %v483_v41 = vld [vmem:[%s2510_s5 + $0x78] sm:$0xff] }
  0x3e   :  { %1521 = vmatmul.msk.f32.gmra.mxu0 %vm151_vm0, %v139_v6  ;;  %1535 = vmatmul.msk.f32.gmra.mxu1 %vm151_vm0, %v139_v6  ;;  %v331_v6 = vld [vmem:[#allocation7 + $0x98] sm:$0xff]  ;;  %v517_v39 = vld [vmem:[%s2510_s5 + $0x188] sm:$0xff] }
  0x3f   :  { %390 = vmatpush.msra.mxu2 %v314_v46  ;;  %413 = vmatpush.msra.mxu3 %v346_v47  ;;  %v515_v44 = vld [vmem:[%s2510_s5 + $0x178] sm:$0xff]  ;;  %v481_v45 = vld [vmem:[%s2510_s5 + $0x68] sm:$0xff] }
  0x40   :  { %v513_v46 = vld [vmem:[%s2510_s5 + $0x168] sm:$0xff]  ;;  %v479_v47 = vld [vmem:[%s2510_s5 + $0x58] sm:$0xff] }
  0x41   :  { %391 = vmatpush.msra.mxu2 %v312_v50  ;;  %414 = vmatpush.msra.mxu3 %v344_v51  ;;  %v511_v50 = vld [vmem:[%s2510_s5 + $0x158] sm:$0xff]  ;;  %v477_v51 = vld [vmem:[%s2510_s5 + $0x48] sm:$0xff] }
  0x42   :  { %v509_v52 = vld [vmem:[%s2510_s5 + $0x148] sm:$0xff] }
  0x43   :  { %422 = vmatpush.msrb.mxu2 %v343_v54  ;;  %445 = vmatpush.msrb.mxu3 %v375_v55  ;;  %v148_v53 = vld [vmem:[%s2505_s0 + $0x68] sm:$0xff]  ;;  %v475_v54 = vld [vmem:[%s2510_s5 + $0x38] sm:$0xff] }
  0x44   :  { %v507_v55 = vld [vmem:[%s2510_s5 + $0x138] sm:$0xff]  ;;  %v469_v0 = vld [vmem:[%s2510_s5 + $0x8] sm:$0xff] }
  0x45   :  { %423 = vmatpush.msrb.mxu2 %v341_v56  ;;  %446 = vmatpush.msrb.mxu3 %v373_v57  ;;  %v501_v1 = vld [vmem:[%s2510_s5 + $0x108] sm:$0xff] }
  0x46   :  { %1522 = vmatmul.msk.f32.gmra.mxu0 %vm151_vm0, %v140_v7  ;;  %1536 = vmatmul.msk.f32.gmra.mxu1 %vm151_vm0, %v140_v7  ;;  %v363_v7 = vld [vmem:[#allocation7 + $0x198] sm:$0xff] }
  0x47   :  { %424 = vmatpush.msrb.mxu2 %v339_v58  ;;  %447 = vmatpush.msrb.mxu3 %v371_v59  ;;  %v473_v58 = vld [vmem:[%s2510_s5 + $0x28] sm:$0xff] }
  0x48   :  { %v505_v59 = vld [vmem:[%s2510_s5 + $0x128] sm:$0xff] }
  0x49   :  { %425 = vmatpush.msrb.mxu2 %v337_v62  ;;  %448 = vmatpush.msrb.mxu3 %v369_v63  ;;  %v471_v62 = vld [vmem:[%s2510_s5 + $0x18] sm:$0xff] }
  0x4a   :  { %v503_v63 = vld [vmem:[%s2510_s5 + $0x118] sm:$0xff] }
  0x4b   :  { %426 = vmatpush.msrb.mxu2 %v335_v2  ;;  %449 = vmatpush.msrb.mxu3 %v367_v3 }
  0x4d   :  { %427 = vmatpush.msrb.mxu2 %v333_v4  ;;  %450 = vmatpush.msrb.mxu3 %v365_v5  ;;  %v498_v4 = vld [vmem:[%s2510_s5 + $0xf0] sm:$0xff] }
  0x4e   :  { %1523 = vmatmul.msk.f32.gmra.mxu0 %vm151_vm0, %v141_v8  ;;  %1537 = vmatmul.msk.f32.gmra.mxu1 %vm151_vm0, %v141_v8  ;;  %v530_v5 = vld [vmem:[%s2510_s5 + $0x1f0] sm:$0xff] }
  0x4f   :  { %428 = vmatpush.msrb.mxu2 %v331_v6  ;;  %451 = vmatpush.msrb.mxu3 %v363_v7 }
  0x56   :  { %1524 = vmatmul.msk.f32.gmra.mxu0 %vm151_vm0, %v142_v9  ;;  %1538 = vmatmul.msk.f32.gmra.mxu1 %vm151_vm0, %v142_v9 }
  0x5e   :  { %1525 = vmatmul.msk.f32.gmra.mxu0 %vm151_vm0, %v143_v10  ;;  %1539 = vmatmul.msk.f32.gmra.mxu1 %vm151_vm0, %v143_v10  ;;  %v491_v10 = vld [vmem:[%s2510_s5 + $0xb8] sm:$0xff] }
  0x5f   :  { %594 = vmatpush.msrb.mxu0 %v491_v10  ;;  %v496_v10 = vld [vmem:[%s2510_s5 + $0xe0] sm:$0xff] }
  0x61   :  { %595 = vmatpush.msrb.mxu0 %v489_v18 }
  0x63   :  { %596 = vmatpush.msrb.mxu0 %v487_v28  ;;  %v482_v28 = vld [vmem:[%s2510_s5 + $0x70] sm:$0xff] }
  0x65   :  { %597 = vmatpush.msrb.mxu0 %v485_v38  ;;  %v476_v38 = vld [vmem:[%s2510_s5 + $0x40] sm:$0xff] }
  0x66   :  { %1526 = vmatmul.msk.f32.gmra.mxu0 %vm151_vm0, %v144_v11  ;;  %1540 = vmatmul.msk.f32.gmra.mxu1 %vm151_vm0, %v144_v11  ;;  %v523_v11 = vld [vmem:[%s2510_s5 + $0x1b8] sm:$0xff] }
  0x67   :  { %623 = vmatpush.msrb.mxu1 %v523_v11  ;;  %598 = vmatpush.msrb.mxu0 %v483_v41  ;;  %v528_v11 = vld [vmem:[%s2510_s5 + $0x1e0] sm:$0xff]  ;;  %v506_v41 = vld [vmem:[%s2510_s5 + $0x130] sm:$0xff] }
  0x69   :  { %624 = vmatpush.msrb.mxu1 %v521_v19  ;;  %599 = vmatpush.msrb.mxu0 %v481_v45 }
  0x6b   :  { %625 = vmatpush.msrb.mxu1 %v519_v29  ;;  %600 = vmatpush.msrb.mxu0 %v479_v47  ;;  %v514_v29 = vld [vmem:[%s2510_s5 + $0x170] sm:$0xff]  ;;  %v504_v47 = vld [vmem:[%s2510_s5 + $0x120] sm:$0xff] }
  0x6d   :  { %626 = vmatpush.msrb.mxu1 %v517_v39  ;;  %601 = vmatpush.msrb.mxu0 %v477_v51  ;;  %v508_v39 = vld [vmem:[%s2510_s5 + $0x140] sm:$0xff]  ;;  %v502_v51 = vld [vmem:[%s2510_s5 + $0x110] sm:$0xff] }
  0x6e   :  { %1527 = vmatmul.msk.f32.gmra.mxu0 %vm151_vm0, %v145_v12  ;;  %1541 = vmatmul.msk.f32.gmra.mxu1 %vm151_vm0, %v145_v12  ;;  %v329_v12 = vld [vmem:[#allocation7 + $0x88] sm:$0xff] }
  0x6f   :  { %429 = vmatpush.msrb.mxu2 %v329_v12  ;;  %627 = vmatpush.msrb.mxu1 %v515_v44  ;;  %v494_v12 = vld [vmem:[%s2510_s5 + $0xd0] sm:$0xff] }
  0x70   :  { %602 = vmatpush.msrb.mxu0 %v475_v54  ;;  %v683_v54 = vld [vmem:[#allocation9 + $0xf8] sm:$0xff] }
  0x71   :  { %430 = vmatpush.msrb.mxu2 %v327_v14  ;;  %628 = vmatpush.msrb.mxu1 %v513_v46  ;;  %v492_v14 = vld [vmem:[%s2510_s5 + $0xc0] sm:$0xff] }
  0x72   :  { %603 = vmatpush.msrb.mxu0 %v473_v58  ;;  %v472_v46 = vld [vmem:[%s2510_s5 + $0x20] sm:$0xff]  ;;  %v681_v58 = vld [vmem:[#allocation9 + $0xe8] sm:$0xff] }
  0x73   :  { %431 = vmatpush.msrb.mxu2 %v325_v16  ;;  %629 = vmatpush.msrb.mxu1 %v511_v50  ;;  %v490_v16 = vld [vmem:[%s2510_s5 + $0xb0] sm:$0xff] }
  0x74   :  { %604 = vmatpush.msrb.mxu0 %v471_v62  ;;  %v470_v50 = vld [vmem:[%s2510_s5 + $0x10] sm:$0xff]  ;;  %v679_v62 = vld [vmem:[#allocation9 + $0xd8] sm:$0xff] }
  0x75   :  { %432 = vmatpush.msrb.mxu2 %v323_v20  ;;  %630 = vmatpush.msrb.mxu1 %v509_v52  ;;  %v488_v20 = vld [vmem:[%s2510_s5 + $0xa0] sm:$0xff] }
  0x76   :  { %1528 = vmatmul.msk.f32.gmra.mxu0 %vm151_vm0, %v146_v13  ;;  %1542 = vmatmul.msk.f32.gmra.mxu1 %vm151_vm0, %v146_v13  ;;  %v361_v13 = vld [vmem:[#allocation7 + $0x188] sm:$0xff]  ;;  %v468_v52 = vld [vmem:[%s2510_s5] sm:$0xff] }
  0x77   :  { %452 = vmatpush.msrb.mxu3 %v361_v13  ;;  %433 = vmatpush.msrb.mxu2 %v321_v24  ;;  %v526_v13 = vld [vmem:[%s2510_s5 + $0x1d0] sm:$0xff] }
  0x78   :  { %631 = vmatpush.msrb.mxu1 %v507_v55  ;;  %605 = vmatpush.msrb.mxu0 %v469_v0  ;;  %v486_v24 = vld [vmem:[%s2510_s5 + $0x90] sm:$0xff] }
  0x79   :  { %453 = vmatpush.msrb.mxu3 %v359_v15  ;;  %434 = vmatpush.msrb.mxu2 %v319_v26  ;;  %v524_v15 = vld [vmem:[%s2510_s5 + $0x1c0] sm:$0xff]  ;;  %v682_v55 = vld [vmem:[#allocation9 + $0xf0] sm:$0xff] }
  0x7a   :  { %632 = vmatpush.msrb.mxu1 %v505_v59  ;;  %v484_v26 = vld [vmem:[%s2510_s5 + $0x80] sm:$0xff] }
  0x7b   :  { %454 = vmatpush.msrb.mxu3 %v357_v17  ;;  %435 = vmatpush.msrb.mxu2 %v317_v30  ;;  %v522_v17 = vld [vmem:[%s2510_s5 + $0x1b0] sm:$0xff]  ;;  %v680_v59 = vld [vmem:[#allocation9 + $0xe0] sm:$0xff] }
  0x7c   :  { %633 = vmatpush.msrb.mxu1 %v503_v63  ;;  %v678_v63 = vld [vmem:[#allocation9 + $0xd0] sm:$0xff] }
  0x7d   :  { %455 = vmatpush.msrb.mxu3 %v355_v21  ;;  %436 = vmatpush.msrb.mxu2 %v315_v32  ;;  %v520_v21 = vld [vmem:[%s2510_s5 + $0x1a0] sm:$0xff] }
  0x7e   :  { %1529 = vmatmul.msk.f32.gmra.mxu0 %vm151_vm0, %v147_v40  ;;  %1543 = vmatmul.msk.f32.gmra.mxu1 %vm151_vm0, %v147_v40  ;;  %v480_v32 = vld [vmem:[%s2510_s5 + $0x60] sm:$0xff]  ;;  %v474_v40 = vld [vmem:[%s2510_s5 + $0x30] sm:$0xff] }
  0x7f   :  { %456 = vmatpush.msrb.mxu3 %v353_v25  ;;  %437 = vmatpush.msrb.mxu2 %v313_v36  ;;  %v518_v25 = vld [vmem:[%s2510_s5 + $0x190] sm:$0xff] }
  0x80   :  { %634 = vmatpush.msrb.mxu1 %v501_v1  ;;  %v478_v36 = vld [vmem:[%s2510_s5 + $0x50] sm:$0xff] }
  0x81   :  { %457 = vmatpush.msrb.mxu3 %v351_v27  ;;  %v516_v27 = vld [vmem:[%s2510_s5 + $0x180] sm:$0xff] }
  0x83   :  { %458 = vmatpush.msrb.mxu3 %v349_v31 }
  0x85   :  { %459 = vmatpush.msrb.mxu3 %v347_v33  ;;  %v512_v33 = vld [vmem:[%s2510_s5 + $0x160] sm:$0xff] }
  0x86   :  { %1530 = vmatmul.msk.f32.gmra.mxu0 %vm151_vm0, %v148_v53  ;;  %1544 = vmatmul.msk.f32.gmra.mxu1 %vm151_vm0, %v148_v53  ;;  %v500_v53 = vld [vmem:[%s2510_s5 + $0x100] sm:$0xff] }
  0x87   :  { %460 = vmatpush.msrb.mxu3 %v345_v37  ;;  %v510_v37 = vld [vmem:[%s2510_s5 + $0x150] sm:$0xff] }
  0x9b   :  { %v1939_v48 = vpop.f32.mrf.mxu0  ;;  %v1941_v49 = vpop.f32.mrf.mxu1 }
  0xa3   :  { %v1949_v60 = vpop.f32.mrf.mxu0  ;;  %v1951_v61 = vpop.f32.mrf.mxu1 }
  0xab   :  { %v1959_v8 = vpop.f32.mrf.mxu0  ;;  %v1961_v9 = vpop.f32.mrf.mxu1 }
  0xb3   :  { %v1975_v22 = vpop.f32.mrf.mxu0  ;;  %v1977_v23 = vpop.f32.mrf.mxu1 }
  0xbb   :  { %v1985_v34 = vpop.f32.mrf.mxu0  ;;  %v1987_v35 = vpop.f32.mrf.mxu1 }
  0xc3   :  { %v2003_v42 = vpop.f32.mrf.mxu0  ;;  %v2005_v43 = vpop.f32.mrf.mxu1 }
  0xcb   :  { %v2038_v56 = vpop.f32.mrf.mxu0  ;;  %v2040_v57 = vpop.f32.mrf.mxu1 }
  0xd3   :  { %v2061_v2 = vpop.f32.mrf.mxu0  ;;  %v2063_v3 = vpop.f32.mrf.mxu1 }
  0xdb   :  { %v235_v6 = vpop.f32.mrf.mxu0  ;;  %v294_v7 = vpop.f32.mrf.mxu1 }
  0xdc   :  { %392 = vmatmul.f32.vlgmr.msra.gmra.mxu2 %v235_v6  ;;  %415 = vmatmul.f32.vlgmr.msra.gmra.mxu3 %v294_v7 }
  0xdd   :  { %532 = vmatpush.msra.mxu2 %v498_v4  ;;  %561 = vmatpush.msra.mxu3 %v530_v5  ;;  %v677_v4 = vld [vmem:[#allocation9 + $0xc8] sm:$0xff]  ;;  %v676_v5 = vld [vmem:[#allocation9 + $0xc0] sm:$0xff] }
  0xdf   :  { %533 = vmatpush.msra.mxu2 %v496_v10  ;;  %562 = vmatpush.msra.mxu3 %v528_v11  ;;  %v666_v10 = vld [vmem:[#allocation9 + $0x70] sm:$0xff] }
  0xe0   :  { %v674_v11 = vld [vmem:[#allocation9 + $0xb0] sm:$0xff] }
  0xe1   :  { %534 = vmatpush.msra.mxu2 %v494_v12  ;;  %563 = vmatpush.msra.mxu3 %v526_v13  ;;  %v665_v13 = vld [vmem:[#allocation9 + $0x68] sm:$0xff] }
  0xe3   :  { %v238_v18 = vpop.f32.mrf.mxu0  ;;  %v297_v19 = vpop.f32.mrf.mxu1  ;;  %535 = vmatpush.msra.mxu2 %v492_v14  ;;  %564 = vmatpush.msra.mxu3 %v524_v15  ;;  %v673_v14 = vld [vmem:[#allocation9 + $0xa8] sm:$0xff]  ;;  %v664_v15 = vld [vmem:[#allocation9 + $0x60] sm:$0xff] }
  0xe4   :  { %395 = vmatmul.f32.gmra.mxu2 %v238_v18  ;;  %418 = vmatmul.f32.gmra.mxu3 %v297_v19 }
  0xe5   :  { %536 = vmatpush.msra.mxu2 %v490_v16  ;;  %565 = vmatpush.msra.mxu3 %v522_v17  ;;  %v672_v17 = vld [vmem:[#allocation9 + $0xa0] sm:$0xff] }
  0xe7   :  { %537 = vmatpush.msra.mxu2 %v488_v20  ;;  %566 = vmatpush.msra.mxu3 %v520_v21  ;;  %v662_v20 = vld [vmem:[#allocation9 + $0x50] sm:$0xff] }
  0xe8   :  { %v670_v21 = vld [vmem:[#allocation9 + $0x90] sm:$0xff] }
  0xe9   :  { %538 = vmatpush.msra.mxu2 %v486_v24  ;;  %567 = vmatpush.msra.mxu3 %v518_v25  ;;  %v661_v24 = vld [vmem:[#allocation9 + $0x48] sm:$0xff] }
  0xea   :  { %v669_v25 = vld [vmem:[#allocation9 + $0x88] sm:$0xff] }
  0xeb   :  { %539 = vmatpush.msra.mxu2 %v484_v26  ;;  %568 = vmatpush.msra.mxu3 %v516_v27  ;;  %v241_v30 = vpop.f32.mrf.mxu0  ;;  %v300_v31 = vpop.f32.mrf.mxu1  ;;  %v660_v26 = vld [vmem:[#allocation9 + $0x40] sm:$0xff] }
  0xec   :  { %438 = vmatmul.f32.vlgmr.msrb.gmra.mxu2 %v235_v6  ;;  %461 = vmatmul.f32.vlgmr.msrb.gmra.mxu3 %v294_v7  ;;  %v667_v6 = vld [vmem:[#allocation9 + $0x78] sm:$0xff]  ;;  %v668_v27 = vld [vmem:[#allocation9 + $0x80] sm:$0xff] }
  0xed   :  { %540 = vmatpush.msra.mxu2 %v482_v28  ;;  %569 = vmatpush.msra.mxu3 %v514_v29  ;;  %v675_v7 = vld [vmem:[#allocation9 + $0xb8] sm:$0xff]  ;;  %v658_v29 = vld [vmem:[#allocation9 + $0x30] sm:$0xff] }
  0xee   :  { %606 = vmatmul.f32.vlgmr.msrb.gmra.mxu0 %v241_v30  ;;  %635 = vmatmul.f32.vlgmr.msrb.gmra.mxu1 %v300_v31  ;;  %v659_v28 = vld [vmem:[#allocation9 + $0x38] sm:$0xff] }
  0xef   :  { %541 = vmatpush.msra.mxu2 %v480_v32  ;;  %570 = vmatpush.msra.mxu3 %v512_v33  ;;  %v655_v32 = vld [vmem:[#allocation9 + $0x18] sm:$0xff]  ;;  %v654_v33 = vld [vmem:[#allocation9 + $0x10] sm:$0xff] }
  0xf1   :  { %542 = vmatpush.msra.mxu2 %v478_v36  ;;  %571 = vmatpush.msra.mxu3 %v510_v37 }
  0xf3   :  { %543 = vmatpush.msra.mxu2 %v476_v38  ;;  %572 = vmatpush.msra.mxu3 %v508_v39  ;;  %v244_v44 = vpop.f32.mrf.mxu0  ;;  %v303_v45 = vpop.f32.mrf.mxu1  ;;  %v653_v38 = vld [vmem:[#allocation9 + $0x8] sm:$0xff]  ;;  %v652_v39 = vld [vmem:[#allocation9] sm:$0xff] }
  0xf4   :  { %441 = vmatmul.f32.gmra.mxu2 %v238_v18  ;;  %464 = vmatmul.f32.gmra.mxu3 %v297_v19  ;;  %v663_v18 = vld [vmem:[#allocation9 + $0x58] sm:$0xff] }
  0xf5   :  { %544 = vmatpush.msra.mxu2 %v474_v40  ;;  %573 = vmatpush.msra.mxu3 %v506_v41  ;;  %v671_v19 = vld [vmem:[#allocation9 + $0x98] sm:$0xff] }
  0xf6   :  { %609 = vmatmul.f32.gmra.mxu0 %v244_v44  ;;  %638 = vmatmul.f32.gmra.mxu1 %v303_v45 }
  0xf7   :  { %545 = vmatpush.msra.mxu2 %v472_v46  ;;  %574 = vmatpush.msra.mxu3 %v504_v47 }
  0xf9   :  { %546 = vmatpush.msra.mxu2 %v470_v50  ;;  %575 = vmatpush.msra.mxu3 %v502_v51 }
  0xfb   :  { %547 = vmatpush.msra.mxu2 %v468_v52  ;;  %576 = vmatpush.msra.mxu3 %v500_v53  ;;  %v247_v0 = vpop.f32.mrf.mxu0  ;;  %v306_v1 = vpop.f32.mrf.mxu1 }
  0xfc   :  { %548 = vmatmul.f32.vlgmr.msra.gmra.mxu2 %v241_v30  ;;  %577 = vmatmul.f32.vlgmr.msra.gmra.mxu3 %v300_v31  ;;  %v657_v30 = vld [vmem:[#allocation9 + $0x28] sm:$0xff]  ;;  %v656_v31 = vld [vmem:[#allocation9 + $0x20] sm:$0xff] }
  0xfd   :  { %707 = vmatpush.msrb.mxu3 %v683_v54  ;;  %684 = vmatpush.msrb.mxu2 %v667_v6 }
  0xfe   :  { %612 = vmatmul.f32.gmra.mxu0 %v247_v0  ;;  %641 = vmatmul.f32.gmra.mxu1 %v306_v1 }
  0xff   :  { %708 = vmatpush.msrb.mxu3 %v682_v55  ;;  %685 = vmatpush.msrb.mxu2 %v666_v10 }
 0x101   :  { %709 = vmatpush.msrb.mxu3 %v681_v58  ;;  %686 = vmatpush.msrb.mxu2 %v665_v13 }
 0x103   :  { %710 = vmatpush.msrb.mxu3 %v680_v59  ;;  %v250_v12 = vpop.f32.mrf.mxu0  ;;  %v309_v16 = vpop.f32.mrf.mxu1  ;;  %687 = vmatpush.msrb.mxu2 %v664_v15 }
 0x104   :  { %551 = vmatmul.f32.gmra.mxu2 %v244_v44  ;;  %580 = vmatmul.f32.gmra.mxu3 %v303_v45 }
 0x105   :  { %711 = vmatpush.msrb.mxu3 %v679_v62  ;;  %688 = vmatpush.msrb.mxu2 %v663_v18 }
 0x106   :  { %615 = vmatmul.f32.gmra.mxu0 %v250_v12  ;;  %644 = vmatmul.f32.gmra.mxu1 %v309_v16 }
 0x107   :  { %712 = vmatpush.msrb.mxu3 %v678_v63  ;;  %689 = vmatpush.msrb.mxu2 %v662_v20  ;;  %v746_v20 = vld [vmem:[#allocation10 + $0x70] sm:$0xff] }
 0x109   :  { %713 = vmatpush.msrb.mxu3 %v677_v4  ;;  %690 = vmatpush.msrb.mxu2 %v661_v24  ;;  %v744_v24 = vld [vmem:[#allocation10 + $0x60] sm:$0xff] }
 0x10b   :  { %714 = vmatpush.msrb.mxu3 %v676_v5  ;;  %691 = vmatpush.msrb.mxu2 %v660_v26  ;;  %v742_v26 = vld [vmem:[#allocation10 + $0x50] sm:$0xff] }
 0x10c   :  { %583 = vmatmul.f32.gmra.mxu3 %v306_v1  ;;  %554 = vmatmul.f32.gmra.mxu2 %v247_v0 }
 0x10d   :  { %715 = vmatpush.msrb.mxu3 %v675_v7  ;;  %692 = vmatpush.msrb.mxu2 %v659_v28  ;;  %v740_v28 = vld [vmem:[#allocation10 + $0x40] sm:$0xff] }
 0x10f   :  { %716 = vmatpush.msrb.mxu3 %v674_v11  ;;  %693 = vmatpush.msrb.mxu2 %v658_v29  ;;  %v741_v29 = vld [vmem:[#allocation10 + $0x48] sm:$0xff] }
 0x111   :  { %717 = vmatpush.msrb.mxu3 %v673_v14  ;;  %694 = vmatpush.msrb.mxu2 %v657_v30  ;;  %v738_v30 = vld [vmem:[#allocation10 + $0x30] sm:$0xff] }
 0x113   :  { %718 = vmatpush.msrb.mxu3 %v672_v17  ;;  %695 = vmatpush.msrb.mxu2 %v656_v31  ;;  %v739_v31 = vld [vmem:[#allocation10 + $0x38] sm:$0xff] }
 0x114   :  { %557 = vmatmul.f32.gmra.mxu2 %v250_v12  ;;  %586 = vmatmul.f32.gmra.mxu3 %v309_v16 }
 0x115   :  { %719 = vmatpush.msrb.mxu3 %v671_v19  ;;  %696 = vmatpush.msrb.mxu2 %v655_v32  ;;  %v736_v32 = vld [vmem:[#allocation10 + $0x20] sm:$0xff] }
 0x117   :  { %720 = vmatpush.msrb.mxu3 %v670_v21  ;;  %697 = vmatpush.msrb.mxu2 %v654_v33  ;;  %v747_v21 = vld [vmem:[#allocation10 + $0x78] sm:$0xff]  ;;  %v737_v33 = vld [vmem:[#allocation10 + $0x28] sm:$0xff] }
 0x119   :  { %721 = vmatpush.msrb.mxu3 %v669_v25  ;;  %698 = vmatpush.msrb.mxu2 %v653_v38  ;;  %v745_v25 = vld [vmem:[#allocation10 + $0x68] sm:$0xff]  ;;  %v732_v38 = vld [vmem:[#allocation10] sm:$0xff] }
 0x11b   :  { %722 = vmatpush.msrb.mxu3 %v668_v27  ;;  %699 = vmatpush.msrb.mxu2 %v652_v39  ;;  %v743_v27 = vld [vmem:[#allocation10 + $0x58] sm:$0xff]  ;;  %v733_v39 = vld [vmem:[#allocation10 + $0x8] sm:$0xff] }
 0x11d   :  { %763 = vmatpush.msra.mxu2 %v746_v20  ;;  %786 = vmatpush.msra.mxu3 %v747_v21  ;;  %v853_v20 = vld [vmem:[%s2513_s8 + $0x180] sm:$0xff]  ;;  %v822_v21 = vld [vmem:[%s2513_s8 + $0x88] sm:$0xff] }
 0x11f   :  { %764 = vmatpush.msra.mxu2 %v744_v24  ;;  %787 = vmatpush.msra.mxu3 %v745_v25  ;;  %v854_v24 = vld [vmem:[%s2513_s8 + $0x188] sm:$0xff] }
 0x121   :  { %765 = vmatpush.msra.mxu2 %v742_v26  ;;  %788 = vmatpush.msra.mxu3 %v743_v27  ;;  %v819_v26 = vld [vmem:[%s2513_s8 + $0x70] sm:$0xff] }
 0x122   :  { %v851_v27 = vld [vmem:[%s2513_s8 + $0x170] sm:$0xff] }
 0x123   :  { %766 = vmatpush.msra.mxu2 %v740_v28  ;;  %789 = vmatpush.msra.mxu3 %v741_v29  ;;  %v820_v29 = vld [vmem:[%s2513_s8 + $0x78] sm:$0xff] }
 0x125   :  { %767 = vmatpush.msra.mxu2 %v738_v30  ;;  %790 = vmatpush.msra.mxu3 %v739_v31  ;;  %v852_v30 = vld [vmem:[%s2513_s8 + $0x178] sm:$0xff]  ;;  %v817_v31 = vld [vmem:[%s2513_s8 + $0x60] sm:$0xff] }
 0x127   :  { %768 = vmatpush.msra.mxu2 %v736_v32  ;;  %791 = vmatpush.msra.mxu3 %v737_v33  ;;  %v849_v32 = vld [vmem:[%s2513_s8 + $0x160] sm:$0xff]  ;;  %v818_v33 = vld [vmem:[%s2513_s8 + $0x68] sm:$0xff] }
 0x15f   :  { %v393_v36 = vpop.f32.mrf.mxu2  ;;  %v416_v37 = vpop.f32.mrf.mxu3 }
 0x160   :  { %v417_v4 = vadd.f32 %v416_v37, %v393_v36  ;;  %v734_v36 = vld [vmem:[#allocation10 + $0x10] sm:$0xff]  ;;  %v735_v37 = vld [vmem:[#allocation10 + $0x18] sm:$0xff] }
 0x161   :  { %769 = vmatpush.msra.mxu2 %v734_v36  ;;  %792 = vmatpush.msra.mxu3 %v735_v37  ;;  %v850_v36 = vld [vmem:[%s2513_s8 + $0x168] sm:$0xff]  ;;  %v815_v37 = vld [vmem:[%s2513_s8 + $0x50] sm:$0xff] }
 0x163   :  { %770 = vmatpush.msra.mxu2 %v732_v38  ;;  %793 = vmatpush.msra.mxu3 %v733_v39  ;;  %v847_v38 = vld [vmem:[%s2513_s8 + $0x150] sm:$0xff]  ;;  %v816_v39 = vld [vmem:[%s2513_s8 + $0x58] sm:$0xff] }
 0x167   :  { %v396_v40 = vpop.f32.mrf.mxu2  ;;  %v419_v41 = vpop.f32.mrf.mxu3 }
 0x168   :  { %v420_v11 = vadd.f32 %v419_v41, %v396_v40  ;;  %v835_v40 = vld [vmem:[%s2513_s8 + $0xf0] sm:$0xff] }
 0x169   :  { %v867_v41 = vld [vmem:[%s2513_s8 + $0x1f0] sm:$0xff]  ;;  %869 = vmatpush.msra.mxu0 %v835_v40  ;;  %v848_v40 = vld [vmem:[%s2513_s8 + $0x158] sm:$0xff] }
 0x16a   :  { %892 = vmatpush.msra.mxu1 %v867_v41  ;;  %v813_v41 = vld [vmem:[%s2513_s8 + $0x40] sm:$0xff] }
 0x16b   :  { %v607_v44 = vpop.f32.mrf.mxu0  ;;  %v636_v45 = vpop.f32.mrf.mxu1 }
 0x16c   :  { %v637_v46 = vadd.f32 %v636_v45, %v607_v44  ;;  %v836_v44 = vld [vmem:[%s2513_s8 + $0xf8] sm:$0xff] }
 0x16d   :  { %v868_v45 = vld [vmem:[%s2513_s8 + $0x1f8] sm:$0xff] }
 0x16f   :  { %v439_v47 = vpop.f32.mrf.mxu2  ;;  %v462_v50 = vpop.f32.mrf.mxu3 }
 0x170   :  { %v463_v51 = vadd.f32 %v462_v50, %v439_v47  ;;  %v865_v47 = vld [vmem:[%s2513_s8 + $0x1e0] sm:$0xff]  ;;  %v834_v50 = vld [vmem:[%s2513_s8 + $0xe8] sm:$0xff] }
 0x171   :  { %893 = vmatpush.msra.mxu1 %v865_v47  ;;  %v814_v47 = vld [vmem:[%s2513_s8 + $0x48] sm:$0xff] }
 0x172   :  { %v649_v52 = vmul.f32 %v637_v46, %v463_v51  ;;  %v833_v46 = vld [vmem:[%s2513_s8 + $0xe0] sm:$0xff]  ;;  %v866_v51 = vld [vmem:[%s2513_s8 + $0x1e8] sm:$0xff] }
 0x173   :  { %v610_v53 = vpop.f32.mrf.mxu0  ;;  %v639_v54 = vpop.f32.mrf.mxu1  ;;  %870 = vmatpush.msra.mxu0 %v833_v46 }
 0x174   :  { %723 = vmatmul.f32.vlgmr.msrb.gmra.mxu3 %v649_v52  ;;  %v640_v55 = vadd.f32 %v639_v54, %v610_v53  ;;  %v831_v52 = vld [vmem:[%s2513_s8 + $0xd0] sm:$0xff]  ;;  %v832_v54 = vld [vmem:[%s2513_s8 + $0xd8] sm:$0xff] }
 0x175   :  { %938 = vmatpush.msrb.mxu3 %v868_v45  ;;  %v863_v53 = vld [vmem:[%s2513_s8 + $0x1d0] sm:$0xff]  ;;  %871 = vmatpush.msra.mxu0 %v831_v52 }
 0x176   :  { %894 = vmatpush.msra.mxu1 %v863_v53  ;;  %v811_v53 = vld [vmem:[%s2513_s8 + $0x30] sm:$0xff] }
 0x177   :  { %v442_v58 = vpop.f32.mrf.mxu2  ;;  %v465_v59 = vpop.f32.mrf.mxu3  ;;  %939 = vmatpush.msrb.mxu3 %v866_v51 }
 0x178   :  { %v466_v62 = vadd.f32 %v465_v59, %v442_v58  ;;  %v829_v58 = vld [vmem:[%s2513_s8 + $0xc0] sm:$0xff] }
 0x179   :  { %v861_v59 = vld [vmem:[%s2513_s8 + $0x1c0] sm:$0xff]  ;;  %872 = vmatpush.msra.mxu0 %v829_v58  ;;  %v844_v58 = vld [vmem:[%s2513_s8 + $0x138] sm:$0xff] }
 0x17a   :  { %v651_v63 = vmul.f32 %v640_v55, %v466_v62  ;;  %v864_v55 = vld [vmem:[%s2513_s8 + $0x1d8] sm:$0xff]  ;;  %v830_v62 = vld [vmem:[%s2513_s8 + $0xc8] sm:$0xff]  ;;  %895 = vmatpush.msra.mxu1 %v861_v59  ;;  %v809_v59 = vld [vmem:[%s2513_s8 + $0x20] sm:$0xff] }
 0x17b   :  { %940 = vmatpush.msrb.mxu3 %v864_v55  ;;  %v812_v55 = vld [vmem:[%s2513_s8 + $0x38] sm:$0xff] }
 0x17c   :  { %726 = vmatmul.f32.gmra.mxu3 %v651_v63  ;;  %v862_v63 = vld [vmem:[%s2513_s8 + $0x1c8] sm:$0xff] }
 0x17d   :  { %941 = vmatpush.msrb.mxu3 %v862_v63  ;;  %v810_v63 = vld [vmem:[%s2513_s8 + $0x28] sm:$0xff] }
 0x17f   :  { %v549_v0 = vpop.f32.mrf.mxu2  ;;  %v578_v1 = vpop.f32.mrf.mxu3 }
 0x180   :  { %v579_v5 = vadd.f32 %v578_v1, %v549_v0  ;;  %v827_v0 = vld [vmem:[%s2513_s8 + $0xb0] sm:$0xff] }
 0x181   :  { %v859_v1 = vld [vmem:[%s2513_s8 + $0x1b0] sm:$0xff]  ;;  %873 = vmatpush.msra.mxu0 %v827_v0  ;;  %v842_v0 = vld [vmem:[%s2513_s8 + $0x128] sm:$0xff] }
 0x182   :  { %v648_v6 = vmul.f32 %v579_v5, %v417_v4  ;;  %v828_v4 = vld [vmem:[%s2513_s8 + $0xb8] sm:$0xff]  ;;  %896 = vmatpush.msra.mxu1 %v859_v1  ;;  %v807_v1 = vld [vmem:[%s2513_s8 + $0x10] sm:$0xff] }
 0x183   :  { %v860_v5 = vld [vmem:[%s2513_s8 + $0x1b8] sm:$0xff] }
 0x184   :  { %700 = vmatmul.f32.vlgmr.msrb.gmra.mxu2 %v648_v6  ;;  %v825_v6 = vld [vmem:[%s2513_s8 + $0xa0] sm:$0xff]  ;;  %942 = vmatpush.msrb.mxu3 %v860_v5  ;;  %v808_v5 = vld [vmem:[%s2513_s8 + $0x18] sm:$0xff] }
 0x185   :  { %915 = vmatpush.msrb.mxu2 %v836_v44  ;;  %874 = vmatpush.msra.mxu0 %v825_v6  ;;  %v845_v44 = vld [vmem:[%s2513_s8 + $0x140] sm:$0xff]  ;;  %v840_v6 = vld [vmem:[%s2513_s8 + $0x118] sm:$0xff] }
 0x187   :  { %v552_v7 = vpop.f32.mrf.mxu2  ;;  %v581_v10 = vpop.f32.mrf.mxu3  ;;  %916 = vmatpush.msrb.mxu2 %v834_v50  ;;  %v846_v50 = vld [vmem:[%s2513_s8 + $0x148] sm:$0xff] }
 0x188   :  { %v582_v12 = vadd.f32 %v581_v10, %v552_v7  ;;  %v857_v7 = vld [vmem:[%s2513_s8 + $0x1a0] sm:$0xff]  ;;  %v826_v10 = vld [vmem:[%s2513_s8 + $0xa8] sm:$0xff] }
 0x189   :  { %917 = vmatpush.msrb.mxu2 %v832_v54  ;;  %897 = vmatpush.msra.mxu1 %v857_v7  ;;  %v843_v54 = vld [vmem:[%s2513_s8 + $0x130] sm:$0xff]  ;;  %v805_v7 = vld [vmem:[%s2513_s8] sm:$0xff] }
 0x18a   :  { %v650_v13 = vmul.f32 %v582_v12, %v420_v11  ;;  %v858_v11 = vld [vmem:[%s2513_s8 + $0x1a8] sm:$0xff]  ;;  %v823_v12 = vld [vmem:[%s2513_s8 + $0x90] sm:$0xff] }
 0x18b   :  { %918 = vmatpush.msrb.mxu2 %v830_v62  ;;  %943 = vmatpush.msrb.mxu3 %v858_v11  ;;  %v841_v62 = vld [vmem:[%s2513_s8 + $0x120] sm:$0xff] }
 0x18c   :  { %703 = vmatmul.f32.gmra.mxu2 %v650_v13  ;;  %v855_v13 = vld [vmem:[%s2513_s8 + $0x190] sm:$0xff]  ;;  %875 = vmatpush.msra.mxu0 %v823_v12  ;;  %v806_v12 = vld [vmem:[%s2513_s8 + $0x8] sm:$0xff] }
 0x18d   :  { %919 = vmatpush.msrb.mxu2 %v828_v4  ;;  %898 = vmatpush.msra.mxu1 %v855_v13  ;;  %v839_v4 = vld [vmem:[%s2513_s8 + $0x110] sm:$0xff]  ;;  %v838_v13 = vld [vmem:[%s2513_s8 + $0x108] sm:$0xff] }
 0x18f   :  { %v584_v14 = vpop.f32.mrf.mxu3  ;;  %v555_v15 = vpop.f32.mrf.mxu2  ;;  %920 = vmatpush.msrb.mxu2 %v826_v10  ;;  %899 = vmatpush.msra.mxu1 %v853_v20  ;;  %v837_v10 = vld [vmem:[%s2513_s8 + $0x100] sm:$0xff] }
 0x190   :  { %v2161_v16 = vadd.f32 %v584_v14, %v555_v15  ;;  %v824_v14 = vld [vmem:[%s2513_s8 + $0x98] sm:$0xff]  ;;  %v989_v20 = vld [vmem:[#allocation2 + $0xe0] sm:$0xff] }
 0x191   :  { %v856_v15 = vld [vmem:[%s2513_s8 + $0x198] sm:$0xff]  ;;  %921 = vmatpush.msrb.mxu2 %v824_v14  ;;  %900 = vmatpush.msra.mxu1 %v851_v27  ;;  %v991_v14 = vld [vmem:[#allocation2 + $0xf0] sm:$0xff] }
 0x192   :  { %944 = vmatpush.msrb.mxu3 %v856_v15  ;;  %v1023_v15 = vld [vmem:[#allocation2 + $0x1f0] sm:$0xff] }
 0x193   :  { %922 = vmatpush.msrb.mxu2 %v822_v21  ;;  %901 = vmatpush.msra.mxu1 %v849_v32  ;;  %v1021_v21 = vld [vmem:[#allocation2 + $0x1e0] sm:$0xff]  ;;  %v1019_v27 = vld [vmem:[#allocation2 + $0x1d0] sm:$0xff]  ;;  %v986_v32 = vld [vmem:[#allocation2 + $0xc8] sm:$0xff] }
 0x194   :  { %945 = vmatpush.msrb.mxu3 %v854_v24  ;;  %v990_v24 = vld [vmem:[#allocation2 + $0xe8] sm:$0xff] }
 0x195   :  { %923 = vmatpush.msrb.mxu2 %v820_v29  ;;  %902 = vmatpush.msra.mxu1 %v847_v38  ;;  %v1020_v29 = vld [vmem:[#allocation2 + $0x1d8] sm:$0xff] }
 0x196   :  { %946 = vmatpush.msrb.mxu3 %v852_v30  ;;  %v985_v30 = vld [vmem:[#allocation2 + $0xc0] sm:$0xff]  ;;  %v984_v38 = vld [vmem:[#allocation2 + $0xb8] sm:$0xff] }
 0x197   :  { %v587_v17 = vpop.f32.mrf.mxu3  ;;  %v558_v18 = vpop.f32.mrf.mxu2  ;;  %924 = vmatpush.msrb.mxu2 %v818_v33  ;;  %903 = vmatpush.msra.mxu1 %v845_v44  ;;  %v1018_v33 = vld [vmem:[#allocation2 + $0x1c8] sm:$0xff] }
 0x198   :  { %v2163_v19 = vadd.f32 %v587_v17, %v558_v18  ;;  %v821_v18 = vld [vmem:[%s2513_s8 + $0x80] sm:$0xff]  ;;  %947 = vmatpush.msrb.mxu3 %v850_v36  ;;  %v983_v36 = vld [vmem:[#allocation2 + $0xb0] sm:$0xff]  ;;  %v982_v44 = vld [vmem:[#allocation2 + $0xa8] sm:$0xff] }
 0x199   :  { %876 = vmatpush.msra.mxu0 %v821_v18  ;;  %925 = vmatpush.msrb.mxu2 %v816_v39  ;;  %v1024_v18 = vld [vmem:[#allocation2 + $0x1f8] sm:$0xff] }
 0x19a   :  { %948 = vmatpush.msrb.mxu3 %v848_v40  ;;  %904 = vmatpush.msra.mxu1 %v843_v54  ;;  %v1016_v39 = vld [vmem:[#allocation2 + $0x1b8] sm:$0xff]  ;;  %v981_v40 = vld [vmem:[#allocation2 + $0xa0] sm:$0xff]  ;;  %v978_v54 = vld [vmem:[#allocation2 + $0x88] sm:$0xff] }
 0x19b   :  { %877 = vmatpush.msra.mxu0 %v819_v26  ;;  %926 = vmatpush.msrb.mxu2 %v814_v47  ;;  %v987_v26 = vld [vmem:[#allocation2 + $0xd0] sm:$0xff] }
 0x19c   :  { %949 = vmatpush.msrb.mxu3 %v846_v50  ;;  %905 = vmatpush.msra.mxu1 %v841_v62  ;;  %v1011_v47 = vld [vmem:[#allocation2 + $0x190] sm:$0xff]  ;;  %v980_v50 = vld [vmem:[#allocation2 + $0x98] sm:$0xff] }
 0x19d   :  { %878 = vmatpush.msra.mxu0 %v817_v31  ;;  %927 = vmatpush.msrb.mxu2 %v812_v55  ;;  %v1017_v31 = vld [vmem:[#allocation2 + $0x1c0] sm:$0xff]  ;;  %v1010_v55 = vld [vmem:[#allocation2 + $0x188] sm:$0xff]  ;;  %v976_v62 = vld [vmem:[#allocation2 + $0x78] sm:$0xff] }
 0x19e   :  { %950 = vmatpush.msrb.mxu3 %v844_v58  ;;  %906 = vmatpush.msra.mxu1 %v839_v4  ;;  %v975_v58 = vld [vmem:[#allocation2 + $0x70] sm:$0xff]  ;;  %v974_v4 = vld [vmem:[#allocation2 + $0x68] sm:$0xff] }
 0x19f   :  { %879 = vmatpush.msra.mxu0 %v815_v37  ;;  %928 = vmatpush.msrb.mxu2 %v810_v63  ;;  %v1015_v37 = vld [vmem:[#allocation2 + $0x1b0] sm:$0xff]  ;;  %v1008_v63 = vld [vmem:[#allocation2 + $0x178] sm:$0xff] }
 0x1a0   :  { %951 = vmatpush.msrb.mxu3 %v842_v0  ;;  %907 = vmatpush.msra.mxu1 %v837_v10  ;;  %v973_v0 = vld [vmem:[#allocation2 + $0x60] sm:$0xff]  ;;  %v972_v10 = vld [vmem:[#allocation2 + $0x58] sm:$0xff] }
 0x1a1   :  { %880 = vmatpush.msra.mxu0 %v813_v41  ;;  %929 = vmatpush.msrb.mxu2 %v808_v5  ;;  %v1013_v41 = vld [vmem:[#allocation2 + $0x1a0] sm:$0xff]  ;;  %v1006_v5 = vld [vmem:[#allocation2 + $0x168] sm:$0xff] }
 0x1a2   :  { %952 = vmatpush.msrb.mxu3 %v840_v6  ;;  %1048 = vmatpush.msrb.mxu1 %v1023_v15  ;;  %v971_v6 = vld [vmem:[#allocation2 + $0x50] sm:$0xff]  ;;  %v1002_v15 = vld [vmem:[#allocation2 + $0x148] sm:$0xff] }
 0x1a3   :  { %881 = vmatpush.msra.mxu0 %v811_v53  ;;  %930 = vmatpush.msrb.mxu2 %v806_v12  ;;  %v1009_v53 = vld [vmem:[#allocation2 + $0x180] sm:$0xff] }
 0x1a4   :  { %953 = vmatpush.msrb.mxu3 %v838_v13  ;;  %1049 = vmatpush.msrb.mxu1 %v1021_v21  ;;  %v969_v12 = vld [vmem:[#allocation2 + $0x40] sm:$0xff]  ;;  %v1000_v21 = vld [vmem:[#allocation2 + $0x138] sm:$0xff] }
 0x1a5   :  { %882 = vmatpush.msra.mxu0 %v809_v59  ;;  %v1007_v59 = vld [vmem:[#allocation2 + $0x170] sm:$0xff]  ;;  %v1001_v13 = vld [vmem:[#allocation2 + $0x140] sm:$0xff] }
 0x1a6   :  { %1050 = vmatpush.msrb.mxu1 %v1019_v27  ;;  %v998_v27 = vld [vmem:[#allocation2 + $0x128] sm:$0xff] }
 0x1a7   :  { %883 = vmatpush.msra.mxu0 %v807_v1  ;;  %v1005_v1 = vld [vmem:[#allocation2 + $0x160] sm:$0xff] }
 0x1a8   :  { %1051 = vmatpush.msrb.mxu1 %v1017_v31  ;;  %v996_v31 = vld [vmem:[#allocation2 + $0x118] sm:$0xff] }
 0x1a9   :  { %884 = vmatpush.msra.mxu0 %v805_v7  ;;  %v1003_v7 = vld [vmem:[#allocation2 + $0x150] sm:$0xff] }
 0x1aa   :  { %1052 = vmatpush.msrb.mxu1 %v1015_v37  ;;  %v994_v37 = vld [vmem:[#allocation2 + $0x108] sm:$0xff] }
 0x1ab   :  { %1025 = vmatpush.msrb.mxu0 %v991_v14  ;;  %v970_v14 = vld [vmem:[#allocation2 + $0x48] sm:$0xff] }
 0x1ac   :  { %1053 = vmatpush.msrb.mxu1 %v1013_v41 }
 0x1ad   :  { %1026 = vmatpush.msrb.mxu0 %v989_v20  ;;  %v968_v20 = vld [vmem:[#allocation2 + $0x38] sm:$0xff] }
 0x1ae   :  { %1054 = vmatpush.msrb.mxu1 %v1011_v47  ;;  %v1151_v47 = vld [vmem:[#allocation4 + $0xf0] sm:$0xff] }
 0x1af   :  { %1027 = vmatpush.msrb.mxu0 %v987_v26  ;;  %v966_v26 = vld [vmem:[#allocation2 + $0x28] sm:$0xff] }
 0x1b0   :  { %1055 = vmatpush.msrb.mxu1 %v1009_v53 }
 0x1b1   :  { %1028 = vmatpush.msrb.mxu0 %v985_v30  ;;  %v964_v30 = vld [vmem:[#allocation2 + $0x18] sm:$0xff] }
 0x1b2   :  { %1056 = vmatpush.msrb.mxu1 %v1007_v59  ;;  %v1150_v59 = vld [vmem:[#allocation4 + $0xe8] sm:$0xff] }
 0x1b3   :  { %1029 = vmatpush.msrb.mxu0 %v983_v36  ;;  %v962_v36 = vld [vmem:[#allocation2 + $0x8] sm:$0xff] }
 0x1b4   :  { %1057 = vmatpush.msrb.mxu1 %v1005_v1  ;;  %v1148_v1 = vld [vmem:[#allocation4 + $0xd8] sm:$0xff] }
 0x1b5   :  { %1030 = vmatpush.msrb.mxu0 %v981_v40 }
 0x1b6   :  { %1058 = vmatpush.msrb.mxu1 %v1003_v7  ;;  %v1145_v7 = vld [vmem:[#allocation4 + $0xc0] sm:$0xff] }
 0x1b8   :  { %1059 = vmatpush.msrb.mxu1 %v1001_v13  ;;  %v1146_v13 = vld [vmem:[#allocation4 + $0xc8] sm:$0xff] }
 0x1f7   :  { %v724_v17 = vpop.f32.mrf.mxu3 }
 0x1ff   :  { %v727_v45 = vpop.f32.mrf.mxu3 }
 0x207   :  { %v701_v25 = vpop.f32.mrf.mxu2 }
 0x208   :  { %v725_v28 = vadd.f32 %v724_v17, %v701_v25  ;;  %v992_v17 = vld [vmem:[#allocation2 + $0xf8] sm:$0xff]  ;;  %v1022_v25 = vld [vmem:[#allocation2 + $0x1e8] sm:$0xff] }
 0x20a   :  { %1594 = vtanh.f32 %v725_v28  ;;  %v988_v28 = vld [vmem:[#allocation2 + $0xd8] sm:$0xff] }
 0x20f   :  { %v704_v46 = vpop.f32.mrf.mxu2 }
 0x210   :  { %v1595_v51 = vpop.eup %1594  ;;  %v728_v52 = vadd.f32 %v727_v45, %v704_v46  ;;  %v1014_v45 = vld [vmem:[#allocation2 + $0x1a8] sm:$0xff]  ;;  %v979_v46 = vld [vmem:[#allocation2 + $0x90] sm:$0xff] }
 0x211   :  { %1545 = vmatmul.msk.f32.vlgmr.msra.gmra.mxu2 %vm748_vm1, %v1595_v51  ;;  %1547 = vmatmul.msk.f32.vlgmr.msra.gmra.mxu3 %vm748_vm1, %v1595_v51  ;;  %v1012_v51 = vld [vmem:[#allocation2 + $0x198] sm:$0xff] }
 0x212   :  { %1596 = vtanh.f32 %v728_v52  ;;  %1071 = vmatpush.msra.mxu2 %v992_v17  ;;  %1094 = vmatpush.msra.mxu3 %v1024_v18  ;;  %v977_v52 = vld [vmem:[#allocation2 + $0x80] sm:$0xff]  ;;  %v967_v17 = vld [vmem:[#allocation2 + $0x30] sm:$0xff] }
 0x213   :  { %1031 = vmatpush.msrb.mxu0 %v979_v46  ;;  %v999_v18 = vld [vmem:[#allocation2 + $0x130] sm:$0xff] }
 0x214   :  { %1072 = vmatpush.msra.mxu2 %v990_v24  ;;  %1095 = vmatpush.msra.mxu3 %v1022_v25  ;;  %v965_v24 = vld [vmem:[#allocation2 + $0x20] sm:$0xff] }
 0x215   :  { %1032 = vmatpush.msrb.mxu0 %v977_v52  ;;  %v997_v25 = vld [vmem:[#allocation2 + $0x120] sm:$0xff]  ;;  %1060 = vmatpush.msrb.mxu1 %v999_v18  ;;  %v1184_v52 = vld [vmem:[#allocation4 + $0x1f8] sm:$0xff] }
 0x216   :  { %1073 = vmatpush.msra.mxu2 %v988_v28  ;;  %1096 = vmatpush.msra.mxu3 %v1020_v29  ;;  %v963_v28 = vld [vmem:[#allocation2 + $0x10] sm:$0xff]  ;;  %v1144_v18 = vld [vmem:[#allocation4 + $0xb8] sm:$0xff] }
 0x217   :  { %1033 = vmatpush.msrb.mxu0 %v975_v58  ;;  %1061 = vmatpush.msrb.mxu1 %v997_v25  ;;  %v995_v29 = vld [vmem:[#allocation2 + $0x110] sm:$0xff]  ;;  %v1181_v58 = vld [vmem:[#allocation4 + $0x1e0] sm:$0xff]  ;;  %v1174_v25 = vld [vmem:[#allocation4 + $0x1a8] sm:$0xff] }
 0x218   :  { %v1597_v11 = vpop.eup %1596  ;;  %1074 = vmatpush.msra.mxu2 %v986_v32  ;;  %1097 = vmatpush.msra.mxu3 %v1018_v33  ;;  %v961_v32 = vld [vmem:[#allocation2] sm:$0xff] }
 0x219   :  { %1546 = vmatmul.msk.f32.gmra.mxu2 %vm748_vm1, %v1597_v11  ;;  %1548 = vmatmul.msk.f32.gmra.mxu3 %vm748_vm1, %v1597_v11  ;;  %v1004_v11 = vld [vmem:[#allocation2 + $0x158] sm:$0xff]  ;;  %v993_v33 = vld [vmem:[#allocation2 + $0x100] sm:$0xff] }
 0x21a   :  { %1075 = vmatpush.msra.mxu2 %v984_v38  ;;  %1098 = vmatpush.msra.mxu3 %v1016_v39  ;;  %v613_v38 = vpop.f32.mrf.mxu0  ;;  %v642_v39 = vpop.f32.mrf.mxu1 }
 0x21b   :  { %1034 = vmatpush.msrb.mxu0 %v973_v0  ;;  %1062 = vmatpush.msrb.mxu1 %v995_v29  ;;  %v643_v40 = vadd.f32 %v642_v39, %v613_v38  ;;  %v1172_v29 = vld [vmem:[#allocation4 + $0x198] sm:$0xff] }
 0x21c   :  { %1076 = vmatpush.msra.mxu2 %v982_v44  ;;  %1099 = vmatpush.msra.mxu3 %v1014_v45  ;;  %v1136_v38 = vld [vmem:[#allocation4 + $0x78] sm:$0xff] }
 0x21d   :  { %1035 = vmatpush.msrb.mxu0 %v971_v6  ;;  %1063 = vmatpush.msrb.mxu1 %v993_v33  ;;  %v1170_v33 = vld [vmem:[#allocation4 + $0x188] sm:$0xff]  ;;  %v1168_v39 = vld [vmem:[#allocation4 + $0x178] sm:$0xff] }
 0x21e   :  { %1077 = vmatpush.msra.mxu2 %v980_v50  ;;  %1100 = vmatpush.msra.mxu3 %v1012_v51  ;;  %v1183_v50 = vld [vmem:[#allocation4 + $0x1f0] sm:$0xff]  ;;  %v1152_v51 = vld [vmem:[#allocation4 + $0xf8] sm:$0xff] }
 0x21f   :  { %1036 = vmatpush.msrb.mxu0 %v969_v12 }
 0x220   :  { %1078 = vmatpush.msra.mxu2 %v978_v54  ;;  %1101 = vmatpush.msra.mxu3 %v1010_v55  ;;  %v1149_v55 = vld [vmem:[#allocation4 + $0xe0] sm:$0xff] }
 0x221   :  { %1037 = vmatpush.msrb.mxu0 %v967_v17  ;;  %v1175_v17 = vld [vmem:[#allocation4 + $0x1b0] sm:$0xff] }
 0x222   :  { %1079 = vmatpush.msra.mxu2 %v976_v62  ;;  %1102 = vmatpush.msra.mxu3 %v1008_v63  ;;  %v616_v53 = vpop.f32.mrf.mxu0  ;;  %v645_v54 = vpop.f32.mrf.mxu1  ;;  %v1182_v62 = vld [vmem:[#allocation4 + $0x1e8] sm:$0xff]  ;;  %v1179_v63 = vld [vmem:[#allocation4 + $0x1d0] sm:$0xff] }
 0x223   :  { %1038 = vmatpush.msrb.mxu0 %v965_v24  ;;  %v646_v0 = vadd.f32 %v645_v54, %v616_v53  ;;  %v1173_v24 = vld [vmem:[#allocation4 + $0x1a0] sm:$0xff]  ;;  %v1162_v53 = vld [vmem:[#allocation4 + $0x148] sm:$0xff]  ;;  %v1127_v54 = vld [vmem:[#allocation4 + $0x30] sm:$0xff] }
 0x224   :  { %1080 = vmatpush.msra.mxu2 %v974_v4  ;;  %1103 = vmatpush.msra.mxu3 %v1006_v5  ;;  %v1180_v4 = vld [vmem:[#allocation4 + $0x1d8] sm:$0xff] }
 0x225   :  { %1039 = vmatpush.msrb.mxu0 %v963_v28  ;;  %v1140_v28 = vld [vmem:[#allocation4 + $0x98] sm:$0xff] }
 0x226   :  { %1081 = vmatpush.msra.mxu2 %v972_v10  ;;  %1104 = vmatpush.msra.mxu3 %v1004_v11  ;;  %v1177_v10 = vld [vmem:[#allocation4 + $0x1c0] sm:$0xff] }
 0x227   :  { %1040 = vmatpush.msrb.mxu0 %v961_v32  ;;  %v1138_v32 = vld [vmem:[#allocation4 + $0x88] sm:$0xff] }
 0x228   :  { %1082 = vmatpush.msra.mxu2 %v970_v14  ;;  %1105 = vmatpush.msra.mxu3 %v1002_v15  ;;  %v1178_v14 = vld [vmem:[#allocation4 + $0x1c8] sm:$0xff]  ;;  %v1143_v15 = vld [vmem:[#allocation4 + $0xb0] sm:$0xff] }
 0x22a   :  { %1083 = vmatpush.msra.mxu2 %v968_v20  ;;  %1106 = vmatpush.msra.mxu3 %v1000_v21  ;;  %v1176_v20 = vld [vmem:[#allocation4 + $0x1b8] sm:$0xff]  ;;  %v1141_v21 = vld [vmem:[#allocation4 + $0xa0] sm:$0xff] }
 0x22c   :  { %1084 = vmatpush.msra.mxu2 %v966_v26  ;;  %1107 = vmatpush.msra.mxu3 %v998_v27  ;;  %v1139_v26 = vld [vmem:[#allocation4 + $0x90] sm:$0xff] }
 0x22d   :  { %v1171_v27 = vld [vmem:[#allocation4 + $0x190] sm:$0xff] }
 0x22e   :  { %1085 = vmatpush.msra.mxu2 %v964_v30  ;;  %1108 = vmatpush.msra.mxu3 %v996_v31  ;;  %v1137_v30 = vld [vmem:[#allocation4 + $0x80] sm:$0xff] }
 0x22f   :  { %v1169_v31 = vld [vmem:[#allocation4 + $0x180] sm:$0xff] }
 0x230   :  { %1086 = vmatpush.msra.mxu2 %v962_v36  ;;  %1109 = vmatpush.msra.mxu3 %v994_v37  ;;  %v1135_v36 = vld [vmem:[#allocation4 + $0x70] sm:$0xff] }
 0x231   :  { %v1167_v37 = vld [vmem:[#allocation4 + $0x170] sm:$0xff] }
 0x294   :  { %v772_v41 = vpop.f32.mrf.mxu2  ;;  %v795_v44 = vpop.f32.mrf.mxu3 }
 0x295   :  { %v801_v45 = vmul.f32 %v772_v41, %v2161_v16  ;;  %v802_v46 = vmul.f32 %v795_v44, %v643_v40  ;;  %v1147_v16 = vld [vmem:[#allocation4 + $0xd0] sm:$0xff]  ;;  %v1133_v40 = vld [vmem:[#allocation4 + $0x60] sm:$0xff]  ;;  %v1134_v44 = vld [vmem:[#allocation4 + $0x68] sm:$0xff] }
 0x296   :  { %v1165_v41 = vld [vmem:[#allocation4 + $0x160] sm:$0xff] }
 0x297   :  { %885 = vmatmul.f32.vlgmr.msra.gmra.mxu0 %v801_v45  ;;  %908 = vmatmul.f32.vlgmr.msra.gmra.mxu1 %v802_v46 }
 0x298   :  { %931 = vmatmul.f32.vlgmr.msrb.gmra.mxu2 %v801_v45  ;;  %954 = vmatmul.f32.vlgmr.msrb.gmra.mxu3 %v802_v46  ;;  %v1166_v45 = vld [vmem:[#allocation4 + $0x168] sm:$0xff]  ;;  %v1131_v46 = vld [vmem:[#allocation4 + $0x50] sm:$0xff] }
 0x299   :  { %1185 = vmatpush.msra.mxu0 %v1151_v47  ;;  %1208 = vmatpush.msra.mxu1 %v1183_v50  ;;  %v1163_v47 = vld [vmem:[#allocation4 + $0x150] sm:$0xff]  ;;  %v1132_v50 = vld [vmem:[#allocation4 + $0x58] sm:$0xff] }
 0x29a   :  { %1231 = vmatpush.msrb.mxu2 %v1152_v51  ;;  %1254 = vmatpush.msrb.mxu3 %v1184_v52  ;;  %v1164_v51 = vld [vmem:[#allocation4 + $0x158] sm:$0xff]  ;;  %v1129_v52 = vld [vmem:[#allocation4 + $0x40] sm:$0xff] }
 0x29b   :  { %1186 = vmatpush.msra.mxu0 %v1149_v55  ;;  %1209 = vmatpush.msra.mxu1 %v1181_v58  ;;  %v1159_v55 = vld [vmem:[#allocation4 + $0x130] sm:$0xff]  ;;  %v1128_v58 = vld [vmem:[#allocation4 + $0x38] sm:$0xff] }
 0x29c   :  { %1232 = vmatpush.msrb.mxu2 %v1150_v59  ;;  %1255 = vmatpush.msrb.mxu3 %v1182_v62  ;;  %v775_v5 = vpop.f32.mrf.mxu2  ;;  %v798_v6 = vpop.f32.mrf.mxu3  ;;  %v1160_v59 = vld [vmem:[#allocation4 + $0x138] sm:$0xff]  ;;  %v1125_v62 = vld [vmem:[#allocation4 + $0x20] sm:$0xff] }
 0x29d   :  { %1187 = vmatpush.msra.mxu0 %v1147_v16  ;;  %1210 = vmatpush.msra.mxu1 %v1179_v63  ;;  %v803_v11 = vmul.f32 %v775_v5, %v2163_v19  ;;  %v804_v12 = vmul.f32 %v798_v6, %v646_v0  ;;  %v1142_v19 = vld [vmem:[#allocation4 + $0xa8] sm:$0xff]  ;;  %v1157_v16 = vld [vmem:[#allocation4 + $0x120] sm:$0xff]  ;;  %v1124_v5 = vld [vmem:[#allocation4 + $0x18] sm:$0xff] }
 0x29e   :  { %1233 = vmatpush.msrb.mxu2 %v1148_v1  ;;  %1256 = vmatpush.msrb.mxu3 %v1180_v4  ;;  %v1126_v63 = vld [vmem:[#allocation4 + $0x28] sm:$0xff]  ;;  %v1123_v1 = vld [vmem:[#allocation4 + $0x10] sm:$0xff]  ;;  %v1156_v6 = vld [vmem:[#allocation4 + $0x118] sm:$0xff] }
 0x29f   :  { %1188 = vmatpush.msra.mxu0 %v1145_v7  ;;  %1211 = vmatpush.msra.mxu1 %v1177_v10  ;;  %v1158_v0 = vld [vmem:[#allocation4 + $0x128] sm:$0xff]  ;;  %v1155_v4 = vld [vmem:[#allocation4 + $0x110] sm:$0xff]  ;;  %v1121_v7 = vld [vmem:[#allocation4] sm:$0xff] }
 0x2a0   :  { %1234 = vmatpush.msrb.mxu2 %v1146_v13  ;;  %1257 = vmatpush.msrb.mxu3 %v1178_v14  ;;  %v1154_v10 = vld [vmem:[#allocation4 + $0x108] sm:$0xff]  ;;  %v2371_v13 = vld [vmem:[#allocation6 + $0xf8] sm:$0xff] }
 0x2a1   :  { %888 = vmatmul.f32.gmra.mxu0 %v803_v11  ;;  %911 = vmatmul.f32.gmra.mxu1 %v804_v12  ;;  %v2373_v14 = vld [vmem:[#allocation6 + $0x1f8] sm:$0xff] }
 0x2a2   :  { %934 = vmatmul.f32.gmra.mxu2 %v803_v11  ;;  %957 = vmatmul.f32.gmra.mxu3 %v804_v12  ;;  %v1311_v11 = vld [vmem:[#allocation6 + $0xf0] sm:$0xff] }
 0x2a3   :  { %1189 = vmatpush.msra.mxu0 %v1143_v15  ;;  %1212 = vmatpush.msra.mxu1 %v1175_v17  ;;  %v1343_v12 = vld [vmem:[#allocation6 + $0x1f0] sm:$0xff]  ;;  %v1309_v15 = vld [vmem:[#allocation6 + $0xe0] sm:$0xff] }
 0x2a4   :  { %1235 = vmatpush.msrb.mxu2 %v1144_v18  ;;  %1258 = vmatpush.msrb.mxu3 %v1176_v20  ;;  %v1341_v17 = vld [vmem:[#allocation6 + $0x1e0] sm:$0xff]  ;;  %v2379_v18 = vld [vmem:[#allocation6 + $0xe8] sm:$0xff] }
 0x2a5   :  { %1190 = vmatpush.msra.mxu0 %v1141_v21  ;;  %1213 = vmatpush.msra.mxu1 %v1173_v24  ;;  %v2381_v20 = vld [vmem:[#allocation6 + $0x1e8] sm:$0xff]  ;;  %v1307_v21 = vld [vmem:[#allocation6 + $0xd0] sm:$0xff] }
 0x2a6   :  { %1236 = vmatpush.msrb.mxu2 %v1142_v19  ;;  %1259 = vmatpush.msrb.mxu3 %v1174_v25  ;;  %v1339_v24 = vld [vmem:[#allocation6 + $0x1d0] sm:$0xff]  ;;  %v2385_v19 = vld [vmem:[#allocation6 + $0xd8] sm:$0xff] }
 0x2a7   :  { %1191 = vmatpush.msra.mxu0 %v1139_v26  ;;  %1214 = vmatpush.msra.mxu1 %v1171_v27  ;;  %v2387_v25 = vld [vmem:[#allocation6 + $0x1d8] sm:$0xff]  ;;  %v1305_v26 = vld [vmem:[#allocation6 + $0xc0] sm:$0xff] }
 0x2a8   :  { %1237 = vmatpush.msrb.mxu2 %v1140_v28  ;;  %1260 = vmatpush.msrb.mxu3 %v1172_v29  ;;  %v1337_v27 = vld [vmem:[#allocation6 + $0x1c0] sm:$0xff]  ;;  %v2391_v28 = vld [vmem:[#allocation6 + $0xc8] sm:$0xff]  ;;  %v1335_v29 = vld [vmem:[#allocation6 + $0x1b0] sm:$0xff] }
 0x2a9   :  { %1192 = vmatpush.msra.mxu0 %v1137_v30  ;;  %1215 = vmatpush.msra.mxu1 %v1169_v31  ;;  %v2397_v30 = vld [vmem:[#allocation6 + $0xb8] sm:$0xff] }
 0x2aa   :  { %1238 = vmatpush.msrb.mxu2 %v1138_v32  ;;  %1261 = vmatpush.msrb.mxu3 %v1170_v33  ;;  %v2399_v31 = vld [vmem:[#allocation6 + $0x1b8] sm:$0xff]  ;;  %v1301_v32 = vld [vmem:[#allocation6 + $0xa0] sm:$0xff] }
 0x2ab   :  { %1041 = vmatmul.f32.vlgmr.msrb.gmra.mxu0 %v1959_v8  ;;  %1064 = vmatmul.f32.vlgmr.msrb.gmra.mxu1 %v1961_v9  ;;  %v1333_v33 = vld [vmem:[#allocation6 + $0x1a0] sm:$0xff] }
 0x2ac   :  { %1087 = vmatmul.f32.vlgmr.msra.gmra.mxu2 %v1959_v8  ;;  %1110 = vmatmul.f32.vlgmr.msra.gmra.mxu3 %v1961_v9  ;;  %v1161_v8 = vld [vmem:[#allocation4 + $0x140] sm:$0xff]  ;;  %v1130_v9 = vld [vmem:[#allocation4 + $0x48] sm:$0xff] }
 0x2ad   :  { %1193 = vmatpush.msra.mxu0 %v1135_v36  ;;  %1216 = vmatpush.msra.mxu1 %v1167_v37  ;;  %v2407_v36 = vld [vmem:[#allocation6 + $0xa8] sm:$0xff] }
 0x2ae   :  { %1239 = vmatpush.msrb.mxu2 %v1136_v38  ;;  %1262 = vmatpush.msrb.mxu3 %v1168_v39  ;;  %v2409_v37 = vld [vmem:[#allocation6 + $0x1a8] sm:$0xff]  ;;  %v1299_v38 = vld [vmem:[#allocation6 + $0x90] sm:$0xff] }
 0x2af   :  { %1194 = vmatpush.msra.mxu0 %v1133_v40  ;;  %1217 = vmatpush.msra.mxu1 %v1165_v41  ;;  %v1331_v39 = vld [vmem:[#allocation6 + $0x190] sm:$0xff]  ;;  %v2413_v40 = vld [vmem:[#allocation6 + $0x98] sm:$0xff] }
 0x2b0   :  { %1240 = vmatpush.msrb.mxu2 %v1134_v44  ;;  %1263 = vmatpush.msrb.mxu3 %v1166_v45  ;;  %v2415_v41 = vld [vmem:[#allocation6 + $0x198] sm:$0xff]  ;;  %v1297_v44 = vld [vmem:[#allocation6 + $0x80] sm:$0xff] }
 0x2b1   :  { %1195 = vmatpush.msra.mxu0 %v1131_v46  ;;  %1218 = vmatpush.msra.mxu1 %v1163_v47  ;;  %v1329_v45 = vld [vmem:[#allocation6 + $0x180] sm:$0xff]  ;;  %v2419_v46 = vld [vmem:[#allocation6 + $0x88] sm:$0xff]  ;;  %v1327_v47 = vld [vmem:[#allocation6 + $0x170] sm:$0xff] }
 0x2b2   :  { %1241 = vmatpush.msrb.mxu2 %v1132_v50  ;;  %1264 = vmatpush.msrb.mxu3 %v1164_v51  ;;  %v2425_v50 = vld [vmem:[#allocation6 + $0x78] sm:$0xff] }
 0x2b3   :  { %1196 = vmatpush.msra.mxu0 %v1129_v52  ;;  %1219 = vmatpush.msra.mxu1 %v1161_v8  ;;  %v2427_v51 = vld [vmem:[#allocation6 + $0x178] sm:$0xff]  ;;  %v1293_v52 = vld [vmem:[#allocation6 + $0x60] sm:$0xff] }
 0x2b4   :  { %1242 = vmatpush.msrb.mxu2 %v1130_v9  ;;  %1265 = vmatpush.msrb.mxu3 %v1162_v53  ;;  %v1325_v8 = vld [vmem:[#allocation6 + $0x160] sm:$0xff]  ;;  %v2431_v9 = vld [vmem:[#allocation6 + $0x68] sm:$0xff] }
 0x2b5   :  { %1044 = vmatmul.f32.gmra.mxu0 %v1975_v22  ;;  %1067 = vmatmul.f32.gmra.mxu1 %v1977_v23  ;;  %v2433_v53 = vld [vmem:[#allocation6 + $0x168] sm:$0xff] }
 0x2b6   :  { %1090 = vmatmul.f32.gmra.mxu2 %v1975_v22  ;;  %1113 = vmatmul.f32.gmra.mxu3 %v1977_v23  ;;  %v1153_v22 = vld [vmem:[#allocation4 + $0x100] sm:$0xff]  ;;  %v1122_v23 = vld [vmem:[#allocation4 + $0x8] sm:$0xff] }
 0x2b7   :  { %1197 = vmatpush.msra.mxu0 %v1127_v54  ;;  %1220 = vmatpush.msra.mxu1 %v1159_v55  ;;  %v1291_v54 = vld [vmem:[#allocation6 + $0x50] sm:$0xff] }
 0x2b8   :  { %1243 = vmatpush.msrb.mxu2 %v1128_v58  ;;  %1266 = vmatpush.msrb.mxu3 %v1160_v59  ;;  %v1323_v55 = vld [vmem:[#allocation6 + $0x150] sm:$0xff]  ;;  %v2437_v58 = vld [vmem:[#allocation6 + $0x58] sm:$0xff] }
 0x2b9   :  { %1198 = vmatpush.msra.mxu0 %v1125_v62  ;;  %1221 = vmatpush.msra.mxu1 %v1157_v16  ;;  %v2439_v59 = vld [vmem:[#allocation6 + $0x158] sm:$0xff]  ;;  %v1289_v62 = vld [vmem:[#allocation6 + $0x40] sm:$0xff] }
 0x2ba   :  { %1244 = vmatpush.msrb.mxu2 %v1126_v63  ;;  %1267 = vmatpush.msrb.mxu3 %v1158_v0  ;;  %v1321_v16 = vld [vmem:[#allocation6 + $0x140] sm:$0xff]  ;;  %v2443_v63 = vld [vmem:[#allocation6 + $0x48] sm:$0xff] }
 0x2bb   :  { %1199 = vmatpush.msra.mxu0 %v1123_v1  ;;  %1222 = vmatpush.msra.mxu1 %v1155_v4  ;;  %v2445_v0 = vld [vmem:[#allocation6 + $0x148] sm:$0xff]  ;;  %v1287_v1 = vld [vmem:[#allocation6 + $0x30] sm:$0xff] }
 0x2bc   :  { %1245 = vmatpush.msrb.mxu2 %v1124_v5  ;;  %1268 = vmatpush.msrb.mxu3 %v1156_v6  ;;  %v1319_v4 = vld [vmem:[#allocation6 + $0x130] sm:$0xff]  ;;  %v1288_v5 = vld [vmem:[#allocation6 + $0x38] sm:$0xff] }
 0x2bd   :  { %1200 = vmatpush.msra.mxu0 %v1121_v7  ;;  %1223 = vmatpush.msra.mxu1 %v1153_v22  ;;  %v1320_v6 = vld [vmem:[#allocation6 + $0x138] sm:$0xff]  ;;  %v1285_v7 = vld [vmem:[#allocation6 + $0x20] sm:$0xff] }
 0x2be   :  { %1246 = vmatpush.msrb.mxu2 %v1122_v23  ;;  %1269 = vmatpush.msrb.mxu3 %v1154_v10  ;;  %v1317_v22 = vld [vmem:[#allocation6 + $0x120] sm:$0xff]  ;;  %v1286_v23 = vld [vmem:[#allocation6 + $0x28] sm:$0xff] }
 0x2bf   :  { %1345 = vmatpush.msrb.mxu0 %v1311_v11  ;;  %1368 = vmatpush.msrb.mxu1 %v1343_v12  ;;  %v1318_v10 = vld [vmem:[#allocation6 + $0x128] sm:$0xff]  ;;  %v1283_v11 = vld [vmem:[#allocation6 + $0x10] sm:$0xff] }
 0x2c0   :  { %1549 = vmatpush.msra.mxu2 %v2371_v13  ;;  %1565 = vmatpush.msra.mxu3 %v2373_v14  ;;  %v1315_v12 = vld [vmem:[#allocation6 + $0x110] sm:$0xff] }
 0x2c1   :  { %1201 = vmatmul.f32.vlgmr.msra.gmra.mxu0 %v1985_v34  ;;  %1224 = vmatmul.f32.vlgmr.msra.gmra.mxu1 %v1987_v35 }
 0x2c2   :  { %1247 = vmatmul.f32.vlgmr.msrb.gmra.mxu2 %v1985_v34  ;;  %1270 = vmatmul.f32.vlgmr.msrb.gmra.mxu3 %v1987_v35  ;;  %v2393_v34 = vld [vmem:[#allocation6 + $0x1c8] sm:$0xff]  ;;  %v1303_v35 = vld [vmem:[#allocation6 + $0xb0] sm:$0xff] }
 0x2c3   :  { %1346 = vmatpush.msrb.mxu0 %v1309_v15  ;;  %1369 = vmatpush.msrb.mxu1 %v1341_v17  ;;  %v1284_v15 = vld [vmem:[#allocation6 + $0x18] sm:$0xff] }
 0x2c4   :  { %1550 = vmatpush.msra.mxu2 %v2379_v18  ;;  %1566 = vmatpush.msra.mxu3 %v2381_v20  ;;  %v1316_v17 = vld [vmem:[#allocation6 + $0x118] sm:$0xff] }
 0x2c5   :  { %1347 = vmatpush.msrb.mxu0 %v1307_v21  ;;  %1370 = vmatpush.msrb.mxu1 %v1339_v24  ;;  %v1281_v21 = vld [vmem:[#allocation6] sm:$0xff] }
 0x2c6   :  { %1551 = vmatpush.msra.mxu2 %v2385_v19  ;;  %1567 = vmatpush.msra.mxu3 %v2387_v25  ;;  %v1313_v24 = vld [vmem:[#allocation6 + $0x100] sm:$0xff] }
 0x2c7   :  { %1348 = vmatpush.msrb.mxu0 %v1305_v26  ;;  %1371 = vmatpush.msrb.mxu1 %v1337_v27  ;;  %v1282_v26 = vld [vmem:[#allocation6 + $0x8] sm:$0xff] }
 0x2c8   :  { %1552 = vmatpush.msra.mxu2 %v2391_v28  ;;  %1568 = vmatpush.msra.mxu3 %v2393_v34  ;;  %v1314_v27 = vld [vmem:[#allocation6 + $0x108] sm:$0xff] }
 0x2c9   :  { %1349 = vmatpush.msrb.mxu0 %v1303_v35  ;;  %1372 = vmatpush.msrb.mxu1 %v1335_v29 }
 0x2ca   :  { %1553 = vmatpush.msra.mxu2 %v2397_v30  ;;  %1569 = vmatpush.msra.mxu3 %v2399_v31 }
 0x2cb   :  { %1204 = vmatmul.f32.gmra.mxu0 %v2003_v42  ;;  %1227 = vmatmul.f32.gmra.mxu1 %v2005_v43 }
 0x2cc   :  { %1250 = vmatmul.f32.gmra.mxu2 %v2003_v42  ;;  %1273 = vmatmul.f32.gmra.mxu3 %v2005_v43  ;;  %v2421_v42 = vld [vmem:[#allocation6 + $0x188] sm:$0xff]  ;;  %v1295_v43 = vld [vmem:[#allocation6 + $0x70] sm:$0xff] }
 0x2cd   :  { %1350 = vmatpush.msrb.mxu0 %v1301_v32  ;;  %1373 = vmatpush.msrb.mxu1 %v1333_v33 }
 0x2ce   :  { %1554 = vmatpush.msra.mxu2 %v2407_v36  ;;  %1570 = vmatpush.msra.mxu3 %v2409_v37 }
 0x2cf   :  { %1351 = vmatpush.msrb.mxu0 %v1299_v38  ;;  %1374 = vmatpush.msrb.mxu1 %v1331_v39 }
 0x2d0   :  { %1555 = vmatpush.msra.mxu2 %v2413_v40  ;;  %1571 = vmatpush.msra.mxu3 %v2415_v41 }
 0x2d1   :  { %1352 = vmatpush.msrb.mxu0 %v1297_v44  ;;  %1375 = vmatpush.msrb.mxu1 %v1329_v45 }
 0x2d2   :  { %1556 = vmatpush.msra.mxu2 %v2419_v46  ;;  %1572 = vmatpush.msra.mxu3 %v2421_v42 }
 0x2d3   :  { %1353 = vmatpush.msrb.mxu0 %v1295_v43  ;;  %1376 = vmatpush.msrb.mxu1 %v1327_v47 }
 0x2d4   :  { %1557 = vmatpush.msra.mxu2 %v2425_v50  ;;  %1573 = vmatpush.msra.mxu3 %v2427_v51 }
 0x2d5   :  { %1354 = vmatpush.msrb.mxu0 %v1293_v52  ;;  %1377 = vmatpush.msrb.mxu1 %v1325_v8 }
 0x2d6   :  { %1558 = vmatpush.msra.mxu2 %v2431_v9  ;;  %1574 = vmatpush.msra.mxu3 %v2433_v53 }
 0x2d7   :  { %1355 = vmatpush.msrb.mxu0 %v1291_v54  ;;  %1378 = vmatpush.msrb.mxu1 %v1323_v55 }
 0x2d8   :  { %1559 = vmatpush.msra.mxu2 %v2437_v58  ;;  %1575 = vmatpush.msra.mxu3 %v2439_v59 }
 0x2d9   :  { %1356 = vmatpush.msrb.mxu0 %v1289_v62  ;;  %1379 = vmatpush.msrb.mxu1 %v1321_v16 }
 0x2da   :  { %1560 = vmatpush.msra.mxu2 %v2443_v63  ;;  %1576 = vmatpush.msra.mxu3 %v2445_v0 }
 0x2db   :  { %1357 = vmatpush.msrb.mxu0 %v1287_v1  ;;  %1380 = vmatpush.msrb.mxu1 %v1319_v4 }
 0x2dc   :  { %1561 = vmatpush.msra.mxu2 %v1288_v5  ;;  %1577 = vmatpush.msra.mxu3 %v1320_v6 }
 0x2dd   :  { %1358 = vmatpush.msrb.mxu0 %v1285_v7  ;;  %1381 = vmatpush.msrb.mxu1 %v1317_v22 }
 0x2de   :  { %1562 = vmatpush.msra.mxu2 %v1286_v23  ;;  %1578 = vmatpush.msra.mxu3 %v1318_v10 }
 0x2df   :  { %1359 = vmatpush.msrb.mxu0 %v1283_v11  ;;  %1382 = vmatpush.msrb.mxu1 %v1315_v12 }
 0x2e0   :  { %1563 = vmatpush.msra.mxu2 %v1284_v15  ;;  %1579 = vmatpush.msra.mxu3 %v1316_v17 }
 0x2e1   :  { %1360 = vmatpush.msrb.mxu0 %v1281_v21  ;;  %1383 = vmatpush.msrb.mxu1 %v1313_v24 }
 0x2e2   :  { %1564 = vmatpush.msra.mxu2 %v1282_v26  ;;  %1580 = vmatpush.msra.mxu3 %v1314_v27 }
 0x2e3   :  { %1361 = vmatmul.f32.vlgmr.msrb.gmra.mxu0 %v2038_v56  ;;  %1384 = vmatmul.f32.vlgmr.msrb.gmra.mxu1 %v2040_v57 }
 0x2e4   :  { %1391 = vmatpush.msra.mxu0 %v2371_v13  ;;  %1410 = vmatmul.f32.vlgmr.msra.gmra.mxu2 %v2061_v2 }
 0x2e5   :  { %1414 = vmatpush.msra.mxu1 %v2373_v14  ;;  %1433 = vmatmul.f32.vlgmr.msra.gmra.mxu3 %v2063_v3 }
 0x2e6   :  { %1392 = vmatpush.msra.mxu0 %v2379_v18 }
 0x2e7   :  { %1415 = vmatpush.msra.mxu1 %v2381_v20 }
 0x2e8   :  { %1393 = vmatpush.msra.mxu0 %v2385_v19 }
 0x2e9   :  { %1416 = vmatpush.msra.mxu1 %v2387_v25 }
 0x2ea   :  { %1394 = vmatpush.msra.mxu0 %v2391_v28 }
 0x2eb   :  { %1417 = vmatpush.msra.mxu1 %v2393_v34  ;;  %1364 = vmatmul.f32.gmra.mxu0 %v2061_v2 }
 0x2ec   :  { %1387 = vmatmul.f32.gmra.mxu1 %v2063_v3  ;;  %1395 = vmatpush.msra.mxu0 %v2397_v30 }
 0x2ed   :  { %1418 = vmatpush.msra.mxu1 %v2399_v31 }
 0x2ee   :  { %1396 = vmatpush.msra.mxu0 %v2407_v36 }
 0x2ef   :  { %1419 = vmatpush.msra.mxu1 %v2409_v37 }
 0x2f0   :  { %1397 = vmatpush.msra.mxu0 %v2413_v40 }
 0x2f1   :  { %1420 = vmatpush.msra.mxu1 %v2415_v41 }
 0x2f2   :  { %1398 = vmatpush.msra.mxu0 %v2419_v46 }
 0x2f3   :  { %1421 = vmatpush.msra.mxu1 %v2421_v42 }
 0x2f4   :  { %1399 = vmatpush.msra.mxu0 %v2425_v50 }
 0x2f5   :  { %1422 = vmatpush.msra.mxu1 %v2427_v51 }
 0x2f6   :  { %1400 = vmatpush.msra.mxu0 %v2431_v9 }
 0x2f7   :  { %1423 = vmatpush.msra.mxu1 %v2433_v53 }
 0x2f8   :  { %1401 = vmatpush.msra.mxu0 %v2437_v58 }
 0x2f9   :  { %1424 = vmatpush.msra.mxu1 %v2439_v59 }
 0x2fa   :  { %1402 = vmatpush.msra.mxu0 %v2443_v63 }
 0x2fb   :  { %1425 = vmatpush.msra.mxu1 %v2445_v0 }
 0x2fc   :  { %1403 = vmatpush.msra.mxu0 %v1288_v5 }
 0x2fd   :  { %1426 = vmatpush.msra.mxu1 %v1320_v6 }
 0x2fe   :  { %1404 = vmatpush.msra.mxu0 %v1286_v23 }
 0x2ff   :  { %1427 = vmatpush.msra.mxu1 %v1318_v10 }
 0x300   :  { %1405 = vmatpush.msra.mxu0 %v1284_v15 }
 0x301   :  { %1428 = vmatpush.msra.mxu1 %v1316_v17 }
 0x302   :  { %1406 = vmatpush.msra.mxu0 %v1282_v26 }
 0x303   :  { %1429 = vmatpush.msra.mxu1 %v1314_v27  ;;  %1407 = vmatmul.f32.vlgmr.msra.gmra.mxu0 %v2038_v56 }
 0x304   :  { %1430 = vmatmul.f32.vlgmr.msra.gmra.mxu1 %v2040_v57 }
 0x314   :  { %v886_v2 = vpop.f32.mrf.mxu0  ;;  %v909_v3 = vpop.f32.mrf.mxu1 }
 0x315   :  { %v910_v13 = vadd.f32 %v909_v3, %v886_v2 }
 0x31b   :  { %v932_v19 = vpop.f32.mrf.mxu2  ;;  %v955_v25 = vpop.f32.mrf.mxu3 }
 0x31c   :  { %v956_v15 = vadd.f32 %v955_v25, %v932_v19 }
 0x31e   :  { %v889_v14 = vpop.f32.mrf.mxu0  ;;  %v912_v18 = vpop.f32.mrf.mxu1 }
 0x31f   :  { %v913_v20 = vadd.f32 %v912_v18, %v889_v14 }
 0x325   :  { %v935_v35 = vpop.f32.mrf.mxu2  ;;  %v958_v29 = vpop.f32.mrf.mxu3 }
 0x326   :  { %v959_v2 = vadd.f32 %v958_v29, %v935_v35 }
 0x328   :  { %v1042_v28 = vpop.f32.mrf.mxu0  ;;  %v1065_v34 = vpop.f32.mrf.mxu1 }
 0x329   :  { %v1066_v46 = vadd.f32 %v1065_v34, %v1042_v28 }
 0x32b   :  { %v1117_v52 = vadd.f32 %v1066_v46, %v1939_v48 }
 0x32f   :  { %v1088_v32 = vpop.f32.mrf.mxu2  ;;  %v1111_v33 = vpop.f32.mrf.mxu3 }
 0x330   :  { %v1112_v9 = vadd.f32 %v1111_v33, %v1088_v32  ;;  %v1762_v33 = vmov 0  }
 0x331   :  { %1592 = vset.pattern.permute.xlu2 %v1762_v33  ;;  %1593 = vset.pattern.permute.xlu0 %v1762_v33 }
 0x332   :  { %v1045_v30 = vpop.f32.mrf.mxu0  ;;  %v1068_v31 = vpop.f32.mrf.mxu1  ;;  %v1118_v16 = vadd.f32 %v1112_v9, %v1941_v49  ;;  %v1484_v9 = vld [vmem:[%s2516_s11] sm:$0xff] }
 0x333   :  { %v1069_v53 = vadd.f32 %v1068_v31, %v1045_v30 }
 0x335   :  { %v1119_v1 = vadd.f32 %v1069_v53, %v1949_v60 }
 0x339   :  { %v1091_v37 = vpop.f32.mrf.mxu2  ;;  %v1114_v57 = vpop.f32.mrf.mxu3 }
 0x33a   :  { %v1115_v55 = vadd.f32 %v1114_v57, %v1091_v37 }
 0x33c   :  { %v1120_v7 = vadd.f32 %v1115_v55, %v1951_v61 }
 0x33e   :  { %v1202_v36 = vpop.f32.mrf.mxu0  ;;  %v1225_v56 = vpop.f32.mrf.mxu1 }
 0x33f   :  { %v1226_v47 = vadd.f32 %v1225_v56, %v1202_v36 }
 0x341   :  { %v1277_v54 = vadd.f32 %v1226_v47, %v1117_v52  ;;  %v1471_v47 = vld [vmem:[%s2515_s10] sm:$0xff] }
 0x345   :  { %v1248_v40 = vpop.f32.mrf.mxu2  ;;  %v1271_v41 = vpop.f32.mrf.mxu3 }
 0x346   :  { %v1272_v58 = vadd.f32 %v1271_v41, %v1248_v40 }
 0x348   :  { %v1205_v38 = vpop.f32.mrf.mxu0  ;;  %v1228_v39 = vpop.f32.mrf.mxu1  ;;  %v1278_v48 = vadd.f32 %v1272_v58, %v1118_v16 }
 0x349   :  { %v1229_v59 = vadd.f32 %v1228_v39, %v1205_v38 }
 0x34b   :  { %v1279_v23 = vadd.f32 %v1229_v59, %v1119_v1 }
 0x34f   :  { %v1251_v42 = vpop.f32.mrf.mxu2  ;;  %v1274_v43 = vpop.f32.mrf.mxu3 }
 0x350   :  { %v1275_v4 = vadd.f32 %v1274_v43, %v1251_v42 }
 0x352   :  { %v1280_v17 = vadd.f32 %v1275_v4, %v1120_v7 }
 0x360   :  { %v1362_v44 = vpop.f32.mrf.mxu0  ;;  %v1385_v45 = vpop.f32.mrf.mxu1 }
 0x361   :  { %v1386_v8 = vadd.f32 %v1385_v45, %v1362_v44 }
 0x363   :  { %v1437_v62 = vadd.f32 %v1386_v8, %v1277_v54 }
 0x365   :  { %v1441_v10 = vadd.f32 %v1437_v62, %v910_v13 }
 0x367   :  { %v1411_v63 = vpop.f32.mrf.mxu2  ;;  %v1445_v27 = vmax.f32 %v1441_v10, 0.0 }
 0x368   :  { %v1365_v50 = vpop.f32.mrf.mxu0  ;;  %v1434_v0 = vpop.f32.mrf.mxu3 }
 0x369   :  { %v1388_v51 = vpop.f32.mrf.mxu1  ;;  %v1435_v11 = vadd.f32 %v1434_v0, %v1411_v63  ;;  %v1455_v28 = vmul.f32 %v1445_v27, %v1445_v27 }
 0x36a   :  { %v1389_v5 = vadd.f32 %v1388_v51, %v1365_v50 }
 0x36b   :  { %v1440_v49 = vadd.f32 %v1435_v11, %v1280_v17 }
 0x36c   :  { %v1439_v21 = vadd.f32 %v1389_v5, %v1279_v23 }
 0x36d   :  { %v1444_v14 = vadd.f32 %v1440_v49, %v959_v2 }
 0x36e   :  { %v1443_v60 = vadd.f32 %v1439_v21, %v913_v20 }
 0x36f   :  { %v1448_v13 = vmax.f32 %v1444_v14, 0.0 }
 0x370   :  { %v1447_v34 = vmax.f32 %v1443_v60, 0.0 }
 0x371   :  { %v1458_v25 = vmul.f32 %v1448_v13, %v1448_v13 }
 0x372   :  { %v1457_v31 = vmul.f32 %v1447_v34, %v1447_v34  ;;  %v1452_v19 = vadd.f32 %v1448_v13, %v1447_v34 }
 0x374   :  { %v1462_v32 = vadd.f32 %v1458_v25, %v1457_v31 }
 0x380   :  { %v1408_v6 = vpop.f32.mrf.mxu0 }
 0x381   :  { %v1431_v22 = vpop.f32.mrf.mxu1 }
 0x382   :  { %v1432_v12 = vadd.f32 %v1431_v22, %v1408_v6 }
 0x384   :  { %v1438_v24 = vadd.f32 %v1432_v12, %v1278_v48 }
 0x386   :  { %v1442_v26 = vadd.f32 %v1438_v24, %v956_v15 }
 0x388   :  { %v1446_v3 = vmax.f32 %v1442_v26, 0.0 }
 0x38a   :  { %v1449_v18 = vadd.f32 %v1446_v3, %v1445_v27  ;;  %v1456_v61 = vmul.f32 %v1446_v3, %v1446_v3 }
 0x38c   :  { %1450 = vadd.xlane.f32.xlu0 %v1449_v18  ;;  %v1459_v30 = vadd.f32 %v1456_v61, %v1455_v28 }
 0x38e   :  { %1460 = vadd.xlane.f32.xlu1 %v1459_v30 }
 0x394   :  { %1453 = vadd.xlane.f32.xlu0 %v1452_v19 }
 0x396   :  { %1463 = vadd.xlane.f32.xlu1 %v1462_v32 }
 0x3ff   :  { %v1451_v20 = vpop.xlane.xlu0 %1450 }
 0x401   :  { %v1461_v35 = vpop.xlane.xlu1 %1460 }
 0x407   :  { %v1454_v29 = vpop.xlane.xlu0 %1453 }
 0x408   :  { %v1465_v36 = vadd.f32 %v1454_v29, %v1451_v20 }
 0x409   :  { %v1464_v56 = vpop.xlane.xlu1 %1463 }
 0x40a   :  { %v1467_v37 = vmul.f32 0.001953125, %v1465_v36  ;;  %v1466_v57 = vadd.f32 %v1464_v56, %v1461_v35 }
 0x40c   :  { %v1469_v38 = vmul.f32 %v1467_v37, %v1467_v37  ;;  %v1468_v39 = vmul.f32 0.001953125, %v1466_v57 }
 0x40e   :  { %v1470_v40 = vsub.f32 %v1468_v39, %v1469_v38 }
 0x410   :  { %v1472_v41 = vadd.f32 1e-05, %v1470_v40 }
 0x412   :  { %1598 = vrsqrt.f32 %v1472_v41  ;;  %vm1479_vm3 = vweird.f32 %v1472_v41 }
 0x418   :  { %v1599_v44 = vpop.eup %1598 }
 0x419   :  { %v1474_v45 = vmul.f32 %v1599_v44, %v1472_v41  ;;  %vm1480_vm2 = vweird.f32 %v1599_v44 }
 0x41a   :  { %vm1481_vm4 = vmor %vm1479_vm3, %vm1480_vm2 }
 0x41b   :  { %v1475_v46 = vmul.f32 %v1599_v44, %v1474_v45 }
 0x41d   :  { %v1476_v42 = vmul.f32 0.5, %v1475_v46 }
 0x41f   :  { %v1477_v43 = vsub.f32 1.5, %v1476_v42 }
 0x421   :  { %v1478_v50 = vmul.f32 %v1599_v44, %v1477_v43 }
 0x423   :  { %v1482_v51 = vsel %vm1481_vm4, %v1599_v44, %v1478_v50 }
 0x424   :  { %v1483_v52 = vmul.f32 %v1482_v51, %v1471_v47 }
 0x426   :  { %1489 = vperm.xlu2 %1592, %v1483_v52   ;;  %v1485_v8 = vmul.f32 %v1483_v52, %v1467_v37 }
 0x428   :  { %v1486_v53 = vsub.f32 %v1484_v9, %v1485_v8 }
 0x42e   :  { %1496 = vperm.xlu2 %1592, %v1486_v53  }
 0x480   :  { %v1490_v54 = vpop.permute.xlu2 %1489 }
 0x481   :  { %v1492_v55 = vmul.f32 %v1490_v54, %v1445_v27  ;;  %v1493_v58 = vmul.f32 %v1490_v54, %v1446_v3  ;;  %v1503_v59 = vmul.f32 %v1490_v54, %v1447_v34  ;;  %v1504_v62 = vmul.f32 %v1490_v54, %v1448_v13 }
 0x488   :  { %v1497_v16 = vpop.permute.xlu2 %1496 }
 0x489   :  { %v1499_v63 = vadd.f32 %v1497_v16, %v1492_v55  ;;  %v1500_v0 = vadd.f32 %v1497_v16, %v1493_v58  ;;  %v1505_v1 = vadd.f32 %v1503_v59, %v1497_v16  ;;  %v1506_v4 = vadd.f32 %v1504_v62, %v1497_v16 }
 0x48b   :  { %1501 = vst [vmem:[%s2517_s12] sm:$0xff] %v1499_v63 }
 0x48c   :  { %1502 = vst [vmem:[%s2517_s12 + $0x8] sm:$0xff] %v1500_v0 }
 0x48d   :  { %1507 = vst [vmem:[%s2517_s12 + $0x10] sm:$0xff] %v1505_v1 }
 0x48e   :  { %1508 = vst [vmem:[%s2517_s12 + $0x18] sm:$0xff] %v1506_v4 }
 0x48f   :  { %1513 = vsyncpa [#allocation3], 1 }
 0x490   :  { %1514 = vsyncpa [#allocation5], 1 }
 0x491   :  { %1515 = vsyncpa [#allocation8], 1 }
 0x492   :  { %1516 = vsyncpa [#allocation11], 1 }

</bundles_post_ra>
